<compile_context>
chip_gen: v6e
topology: v6e:2x2x1
jax: 0.10.0
libtpu: 0.0.40
codegen_flags: <defaults>
</compile_context>

<pallas_src>
import jax
import jax.numpy as jnp
from jax.experimental import pallas as pl
from jax.experimental.pallas import tpu as pltpu  # noqa: F401  (not needed for this tiny single-block kernel)

N, CIN, H, W = 1, 192, 7, 7
COUT, KH, KW = 48, 3, 3

WPAD = W + 2                      # padded width = row stride of the flat buffer (9)
NROWS_VALID = (H + 2) * WPAD      # 81 rows of the padded image
NROWS = 88                        # 81 -> 88 (multiple of 8 sublanes; covers max slice 20+64)
MTILE = 64                        # output rows incl. column bleed (7*9 = 63 -> 64)
NPAD = 128                        # Cout padded 48 -> 128 lanes (unmasked stores)


def _relu_conv_kernel(x_ref, w_ref, o_ref):
    # x_ref: (88, 192) f32  -- spatially zero-padded, row-flattened (h*9 + w) input
    # w_ref: (9, 192, 128) bf16 -- per-tap weights, Cout zero-padded to 128
    # o_ref: (64, 128) f32  -- rows p = h*9 + w (w < 7 valid), cols < 48 valid
    acc = jnp.zeros((MTILE, NPAD), dtype=jnp.float32)
    for kh in range(KH):
        for kw in range(KW):
            off = kh * WPAD + kw                                    # static row offset, 0..20
            patch = jnp.maximum(x_ref[pl.ds(off, MTILE), :], 0.0)   # ReLU (pad zeros stay zero)
            acc += jnp.dot(
                patch.astype(jnp.bfloat16),
                w_ref[kh * KW + kw],
                preferred_element_type=jnp.float32,
            )
    o_ref[...] = acc


def prepare_weights(w_oihw: jax.Array) -> jax.Array:
    """One-time weight layout transform: OIHW (48,192,3,3) -> (9, 192, 128) bf16."""
    w_hwio = jnp.transpose(w_oihw, (2, 3, 1, 0))                 # (3, 3, 192, 48)
    w_flat = w_hwio.reshape(KH * KW, CIN, COUT)                  # (9, 192, 48)
    w_pad = jnp.pad(w_flat, ((0, 0), (0, 0), (0, NPAD - COUT)))  # (9, 192, 128)
    return w_pad.astype(jnp.bfloat16)


def relu_conv2d(x_nchw: jax.Array, w_prepared: jax.Array) -> jax.Array:
    """Equivalent of ReLU(inplace) + Conv2d(192, 48, 3, padding=1, bias=False).

    x_nchw:     (1, 192, 7, 7) float32
    w_prepared: (9, 192, 128) bfloat16 from prepare_weights()
    returns:    (1, 48, 7, 7) float32
    """
    # NCHW -> (H, W, C), zero-pad spatially, flatten rows (h*9 + w), pad 81 -> 88 rows.
    x_hwc = jnp.transpose(x_nchw, (0, 2, 3, 1)).reshape(H, W, CIN)
    x_sp = jnp.pad(x_hwc, ((1, 1), (1, 1), (0, 0)))              # (9, 9, 192)
    x_flat = x_sp.reshape(NROWS_VALID, CIN)                      # (81, 192)
    x_flat = jnp.pad(x_flat, ((0, NROWS - NROWS_VALID), (0, 0))) # (88, 192)

    out = pl.pallas_call(
        _relu_conv_kernel,
        out_shape=jax.ShapeDtypeStruct((MTILE, NPAD), jnp.float32),
        in_specs=[
            pl.BlockSpec((NROWS, CIN), lambda: (0, 0)),
            pl.BlockSpec((KH * KW, CIN, NPAD), lambda: (0, 0, 0)),
        ],
        out_specs=pl.BlockSpec((MTILE, NPAD), lambda: (0, 0)),
    )(x_flat, w_prepared)

    # Discard column-bleed rows (w >= 7) and padded channels, back to NCHW.
    o = out[: H * WPAD].reshape(H, WPAD, NPAD)[:, :W, :COUT]     # (7, 7, 48)
    return jnp.transpose(o, (2, 0, 1))[None]                     # (1, 48, 7, 7)


if __name__ == "__main__":
    key = jax.random.PRNGKey(0)
    kx, kw = jax.random.split(key)
    x = jax.random.normal(kx, (N, CIN, H, W), dtype=jnp.float32)
    # Deterministic synthetic weights (Kaiming-ish scale), PyTorch OIHW layout.
    w = jax.random.normal(kw, (COUT, CIN, KH, KW), dtype=jnp.float32) * (
        1.0 / (CIN * KH * KW) ** 0.5
    )

    w_prep = prepare_weights(w)          # one-time init work, outside the hot path
    fwd = jax.jit(relu_conv2d)
    out = jax.block_until_ready(fwd(x, w_prep))

    # Sanity check against XLA's native f32 conv.
    ref = jax.lax.conv_general_dilated(
        jnp.maximum(x, 0.0),
        w,
        window_strides=(1, 1),
        padding=((1, 1), (1, 1)),
        dimension_numbers=("NCHW", "OIHW", "NCHW"),
    )
    assert out.shape == (N, COUT, H, W)
    # bf16 MXU inputs with f32 accumulation: compare at a bf16-appropriate tolerance.
    assert jnp.allclose(out, ref, atol=1e-2, rtol=1e-2)

    print("KERNEL_OK")
</pallas_src>

<mosaic_0001>
module attributes {stable_mosaic.version = 11 : i64} {
  func.func @_relu_conv_kernel(%arg0: memref<88x192xf32, #tpu.memory_space<vmem>>, %arg1: memref<9x192x128xbf16, #tpu.memory_space<vmem>>, %arg2: memref<64x128xf32, #tpu.memory_space<vmem>>) attributes {dimension_semantics = [], scalar_prefetch = 0 : i64, scratch_operands = 0 : i64, tpu.core_type = #tpu.core_type<tc>} {
    %cst = arith.constant 0.000000e+00 : f32
    %0 = vector.broadcast %cst : f32 to vector<64x128xf32>
    %c0 = arith.constant 0 : index
    %c0_0 = arith.constant 0 : index
    %1 = vector.load %arg0[%c0, %c0_0] : memref<88x192xf32, #tpu.memory_space<vmem>>, vector<64x192xf32>
    %cst_1 = arith.constant 0.000000e+00 : f32
    %2 = vector.broadcast %cst_1 : f32 to vector<64x192xf32>
    %3 = arith.maximumf %1, %2 : vector<64x192xf32>
    %4 = arith.truncf %3 : vector<64x192xf32> to vector<64x192xbf16>
    %c0_2 = arith.constant 0 : index
    %c0_3 = arith.constant 0 : index
    %c0_4 = arith.constant 0 : index
    %5 = vector.load %arg1[%c0_2, %c0_3, %c0_4] : memref<9x192x128xbf16, #tpu.memory_space<vmem>>, vector<1x192x128xbf16>
    %6 = vector.shape_cast %5 : vector<1x192x128xbf16> to vector<192x128xbf16>
    %cst_5 = arith.constant dense<0.000000e+00> : vector<64x128xf32>
    %7 = tpu.matmul %4, %6, %cst_5 {dimension_numbers = #tpu.dot_dimension_numbers<[1], [0], [0], [1], [0, 0, 1, 1], [], []>} : vector<64x192xbf16>, vector<192x128xbf16>, vector<64x128xf32> -> vector<64x128xf32>
    %8 = arith.addf %0, %7 : vector<64x128xf32>
    %c1 = arith.constant 1 : index
    %c0_6 = arith.constant 0 : index
    %9 = vector.load %arg0[%c1, %c0_6] : memref<88x192xf32, #tpu.memory_space<vmem>>, vector<64x192xf32>
    %cst_7 = arith.constant 0.000000e+00 : f32
    %10 = vector.broadcast %cst_7 : f32 to vector<64x192xf32>
    %11 = arith.maximumf %9, %10 : vector<64x192xf32>
    %12 = arith.truncf %11 : vector<64x192xf32> to vector<64x192xbf16>
    %c1_8 = arith.constant 1 : index
    %c0_9 = arith.constant 0 : index
    %c0_10 = arith.constant 0 : index
    %13 = vector.load %arg1[%c1_8, %c0_9, %c0_10] : memref<9x192x128xbf16, #tpu.memory_space<vmem>>, vector<1x192x128xbf16>
    %14 = vector.shape_cast %13 : vector<1x192x128xbf16> to vector<192x128xbf16>
    %cst_11 = arith.constant dense<0.000000e+00> : vector<64x128xf32>
    %15 = tpu.matmul %12, %14, %cst_11 {dimension_numbers = #tpu.dot_dimension_numbers<[1], [0], [0], [1], [0, 0, 1, 1], [], []>} : vector<64x192xbf16>, vector<192x128xbf16>, vector<64x128xf32> -> vector<64x128xf32>
    %16 = arith.addf %8, %15 : vector<64x128xf32>
    %c2 = arith.constant 2 : index
    %c0_12 = arith.constant 0 : index
    %17 = vector.load %arg0[%c2, %c0_12] : memref<88x192xf32, #tpu.memory_space<vmem>>, vector<64x192xf32>
    %cst_13 = arith.constant 0.000000e+00 : f32
    %18 = vector.broadcast %cst_13 : f32 to vector<64x192xf32>
    %19 = arith.maximumf %17, %18 : vector<64x192xf32>
    %20 = arith.truncf %19 : vector<64x192xf32> to vector<64x192xbf16>
    %c2_14 = arith.constant 2 : index
    %c0_15 = arith.constant 0 : index
    %c0_16 = arith.constant 0 : index
    %21 = vector.load %arg1[%c2_14, %c0_15, %c0_16] : memref<9x192x128xbf16, #tpu.memory_space<vmem>>, vector<1x192x128xbf16>
    %22 = vector.shape_cast %21 : vector<1x192x128xbf16> to vector<192x128xbf16>
    %cst_17 = arith.constant dense<0.000000e+00> : vector<64x128xf32>
    %23 = tpu.matmul %20, %22, %cst_17 {dimension_numbers = #tpu.dot_dimension_numbers<[1], [0], [0], [1], [0, 0, 1, 1], [], []>} : vector<64x192xbf16>, vector<192x128xbf16>, vector<64x128xf32> -> vector<64x128xf32>
    %24 = arith.addf %16, %23 : vector<64x128xf32>
    %c9 = arith.constant 9 : index
    %c0_18 = arith.constant 0 : index
    %25 = vector.load %arg0[%c9, %c0_18] : memref<88x192xf32, #tpu.memory_space<vmem>>, vector<64x192xf32>
    %cst_19 = arith.constant 0.000000e+00 : f32
    %26 = vector.broadcast %cst_19 : f32 to vector<64x192xf32>
    %27 = arith.maximumf %25, %26 : vector<64x192xf32>
    %28 = arith.truncf %27 : vector<64x192xf32> to vector<64x192xbf16>
    %c3 = arith.constant 3 : index
    %c0_20 = arith.constant 0 : index
    %c0_21 = arith.constant 0 : index
    %29 = vector.load %arg1[%c3, %c0_20, %c0_21] : memref<9x192x128xbf16, #tpu.memory_space<vmem>>, vector<1x192x128xbf16>
    %30 = vector.shape_cast %29 : vector<1x192x128xbf16> to vector<192x128xbf16>
    %cst_22 = arith.constant dense<0.000000e+00> : vector<64x128xf32>
    %31 = tpu.matmul %28, %30, %cst_22 {dimension_numbers = #tpu.dot_dimension_numbers<[1], [0], [0], [1], [0, 0, 1, 1], [], []>} : vector<64x192xbf16>, vector<192x128xbf16>, vector<64x128xf32> -> vector<64x128xf32>
    %32 = arith.addf %24, %31 : vector<64x128xf32>
    %c10 = arith.constant 10 : index
    %c0_23 = arith.constant 0 : index
    %33 = vector.load %arg0[%c10, %c0_23] : memref<88x192xf32, #tpu.memory_space<vmem>>, vector<64x192xf32>
    %cst_24 = arith.constant 0.000000e+00 : f32
    %34 = vector.broadcast %cst_24 : f32 to vector<64x192xf32>
    %35 = arith.maximumf %33, %34 : vector<64x192xf32>
    %36 = arith.truncf %35 : vector<64x192xf32> to vector<64x192xbf16>
    %c4 = arith.constant 4 : index
    %c0_25 = arith.constant 0 : index
    %c0_26 = arith.constant 0 : index
    %37 = vector.load %arg1[%c4, %c0_25, %c0_26] : memref<9x192x128xbf16, #tpu.memory_space<vmem>>, vector<1x192x128xbf16>
    %38 = vector.shape_cast %37 : vector<1x192x128xbf16> to vector<192x128xbf16>
    %cst_27 = arith.constant dense<0.000000e+00> : vector<64x128xf32>
    %39 = tpu.matmul %36, %38, %cst_27 {dimension_numbers = #tpu.dot_dimension_numbers<[1], [0], [0], [1], [0, 0, 1, 1], [], []>} : vector<64x192xbf16>, vector<192x128xbf16>, vector<64x128xf32> -> vector<64x128xf32>
    %40 = arith.addf %32, %39 : vector<64x128xf32>
    %c11 = arith.constant 11 : index
    %c0_28 = arith.constant 0 : index
    %41 = vector.load %arg0[%c11, %c0_28] : memref<88x192xf32, #tpu.memory_space<vmem>>, vector<64x192xf32>
    %cst_29 = arith.constant 0.000000e+00 : f32
    %42 = vector.broadcast %cst_29 : f32 to vector<64x192xf32>
    %43 = arith.maximumf %41, %42 : vector<64x192xf32>
    %44 = arith.truncf %43 : vector<64x192xf32> to vector<64x192xbf16>
    %c5 = arith.constant 5 : index
    %c0_30 = arith.constant 0 : index
    %c0_31 = arith.constant 0 : index
    %45 = vector.load %arg1[%c5, %c0_30, %c0_31] : memref<9x192x128xbf16, #tpu.memory_space<vmem>>, vector<1x192x128xbf16>
    %46 = vector.shape_cast %45 : vector<1x192x128xbf16> to vector<192x128xbf16>
    %cst_32 = arith.constant dense<0.000000e+00> : vector<64x128xf32>
    %47 = tpu.matmul %44, %46, %cst_32 {dimension_numbers = #tpu.dot_dimension_numbers<[1], [0], [0], [1], [0, 0, 1, 1], [], []>} : vector<64x192xbf16>, vector<192x128xbf16>, vector<64x128xf32> -> vector<64x128xf32>
    %48 = arith.addf %40, %47 : vector<64x128xf32>
    %c18 = arith.constant 18 : index
    %c0_33 = arith.constant 0 : index
    %49 = vector.load %arg0[%c18, %c0_33] : memref<88x192xf32, #tpu.memory_space<vmem>>, vector<64x192xf32>
    %cst_34 = arith.constant 0.000000e+00 : f32
    %50 = vector.broadcast %cst_34 : f32 to vector<64x192xf32>
    %51 = arith.maximumf %49, %50 : vector<64x192xf32>
    %52 = arith.truncf %51 : vector<64x192xf32> to vector<64x192xbf16>
    %c6 = arith.constant 6 : index
    %c0_35 = arith.constant 0 : index
    %c0_36 = arith.constant 0 : index
    %53 = vector.load %arg1[%c6, %c0_35, %c0_36] : memref<9x192x128xbf16, #tpu.memory_space<vmem>>, vector<1x192x128xbf16>
    %54 = vector.shape_cast %53 : vector<1x192x128xbf16> to vector<192x128xbf16>
    %cst_37 = arith.constant dense<0.000000e+00> : vector<64x128xf32>
    %55 = tpu.matmul %52, %54, %cst_37 {dimension_numbers = #tpu.dot_dimension_numbers<[1], [0], [0], [1], [0, 0, 1, 1], [], []>} : vector<64x192xbf16>, vector<192x128xbf16>, vector<64x128xf32> -> vector<64x128xf32>
    %56 = arith.addf %48, %55 : vector<64x128xf32>
    %c19 = arith.constant 19 : index
    %c0_38 = arith.constant 0 : index
    %57 = vector.load %arg0[%c19, %c0_38] : memref<88x192xf32, #tpu.memory_space<vmem>>, vector<64x192xf32>
    %cst_39 = arith.constant 0.000000e+00 : f32
    %58 = vector.broadcast %cst_39 : f32 to vector<64x192xf32>
    %59 = arith.maximumf %57, %58 : vector<64x192xf32>
    %60 = arith.truncf %59 : vector<64x192xf32> to vector<64x192xbf16>
    %c7 = arith.constant 7 : index
    %c0_40 = arith.constant 0 : index
    %c0_41 = arith.constant 0 : index
    %61 = vector.load %arg1[%c7, %c0_40, %c0_41] : memref<9x192x128xbf16, #tpu.memory_space<vmem>>, vector<1x192x128xbf16>
    %62 = vector.shape_cast %61 : vector<1x192x128xbf16> to vector<192x128xbf16>
    %cst_42 = arith.constant dense<0.000000e+00> : vector<64x128xf32>
    %63 = tpu.matmul %60, %62, %cst_42 {dimension_numbers = #tpu.dot_dimension_numbers<[1], [0], [0], [1], [0, 0, 1, 1], [], []>} : vector<64x192xbf16>, vector<192x128xbf16>, vector<64x128xf32> -> vector<64x128xf32>
    %64 = arith.addf %56, %63 : vector<64x128xf32>
    %c20 = arith.constant 20 : index
    %c0_43 = arith.constant 0 : index
    %65 = vector.load %arg0[%c20, %c0_43] : memref<88x192xf32, #tpu.memory_space<vmem>>, vector<64x192xf32>
    %cst_44 = arith.constant 0.000000e+00 : f32
    %66 = vector.broadcast %cst_44 : f32 to vector<64x192xf32>
    %67 = arith.maximumf %65, %66 : vector<64x192xf32>
    %68 = arith.truncf %67 : vector<64x192xf32> to vector<64x192xbf16>
    %c8 = arith.constant 8 : index
    %c0_45 = arith.constant 0 : index
    %c0_46 = arith.constant 0 : index
    %69 = vector.load %arg1[%c8, %c0_45, %c0_46] : memref<9x192x128xbf16, #tpu.memory_space<vmem>>, vector<1x192x128xbf16>
    %70 = vector.shape_cast %69 : vector<1x192x128xbf16> to vector<192x128xbf16>
    %cst_47 = arith.constant dense<0.000000e+00> : vector<64x128xf32>
    %71 = tpu.matmul %68, %70, %cst_47 {dimension_numbers = #tpu.dot_dimension_numbers<[1], [0], [0], [1], [0, 0, 1, 1], [], []>} : vector<64x192xbf16>, vector<192x128xbf16>, vector<64x128xf32> -> vector<64x128xf32>
    %72 = arith.addf %64, %71 : vector<64x128xf32>
    %c0_48 = arith.constant 0 : index
    %c0_49 = arith.constant 0 : index
    %73 = vector.load %arg2[%c0_48, %c0_49] : memref<64x128xf32, #tpu.memory_space<vmem>>, vector<64x128xf32>
    tpu.vector_store %arg2[%c0_48, %c0_49], %72 {strides = array<i32>} : memref<64x128xf32, #tpu.memory_space<vmem>>, vector<64x128xf32>,
    return
  }
}

</mosaic_0001>

<bundles_post_ra>
// kernel: relu_conv2d.1
= control target key start
LH: loop header
LB: loop body
LE: loop exit
PB: predicated region body
PF: predicated region fallthrough
CT: control target
= control target key end

     0   :  { %v2748_v0 = vmov 0   ;;  %vm262_vm0 = vcmask 523264   ;;  %vm113_vm1 = vsmask.f32 7424  ;;  %vm533_vm2 = vcmask 1046528   ;;  %s3909_s1 = inlined_call_operand.vmem [shape: bf16[9,192,128], index: 1, kind: input, shape index: {}]   ;;  %s3910_s0 = inlined_call_operand.vmem [shape: f32[88,192], index: 0, kind: input, shape index: {}]   ;;  %s3911_s2 = inlined_call_operand.vmem [shape: f32[64,128], index: 2, kind: output, shape index: {}]  }
   0x1   :  { %275 = vmatprep.subr.bf16.mxu0 %v2748_v0  ;;  %421 = vmatprep.subr.bf16.mxu1 %v2748_v0  ;;  %v2640_v1 = vld [vmem:[%s3909_s1 + $0x98] sm:$0xff]   ;;  %v2642_v3 = vld [vmem:[%s3909_s1 + $0x90] sm:$0xff]   ;;  %v2644_v5 = vld [vmem:[%s3909_s1 + $0x88] sm:$0xff]   ;;  %vm1280_vm3 = vsmask.f32 6400  ;;  %vm2087_vm4 = vcmask 1045504  }
   0x2   :  { %v2641_v2 = vld [vmem:[%s3909_s1 + $0x38] sm:$0xff]   ;;  %276 = vmatpush1.bf16.msra.mxu0 %v2640_v1  ;;  %v2643_v4 = vld [vmem:[%s3909_s1 + $0x30] sm:$0xff]   ;;  %v2645_v6 = vld [vmem:[%s3909_s1 + $0x28] sm:$0xff]  }
   0x3   :  { %422 = vmatpush1.bf16.msra.mxu1 %v2641_v2  ;;  %277 = vmatprep.subr.bf16.mxu0 %v2748_v0  ;;  %v2646_v7 = vld [vmem:[%s3909_s1 + $0x80] sm:$0xff]   ;;  %v2648_v9 = vld [vmem:[%s3909_s1 + $0x78] sm:$0xff]   ;;  %v2650_v11 = vld [vmem:[%s3909_s1 + $0x70] sm:$0xff]  }
   0x4   :  { %423 = vmatprep.subr.bf16.mxu1 %v2748_v0  ;;  %v2647_v8 = vld [vmem:[%s3909_s1 + $0x20] sm:$0xff]   ;;  %v2649_v10 = vld [vmem:[%s3909_s1 + $0x18] sm:$0xff]   ;;  %v2651_v12 = vld [vmem:[%s3909_s1 + $0x10] sm:$0xff]  }
   0x5   :  { %v2652_v13 = vld [vmem:[%s3909_s1 + $0x68] sm:$0xff]   ;;  %v2654_v15 = vld [vmem:[%s3909_s1 + $0x60] sm:$0xff]   ;;  %v15_v16 = vld [vmem:[%s3910_s0 + $0x18] sm:$0xff] }
   0x6   :  { %278 = vmatpush1.bf16.msra.mxu0 %v2642_v3  ;;  %v2653_v14 = vld [vmem:[%s3909_s1 + $0x8] sm:$0xff]   ;;  %v2832_v18 = vld [vmem:[%s3910_s0 + $0x38] sm:$0xff]  ;;  %v2834_v19 = vmax.f32 %v15_v16, 0.0  ;;  %v14_v26 = vld [vmem:[%s3910_s0 + $0x10] sm:$0xff] }
   0x7   :  { %424 = vmatpush1.bf16.msra.mxu1 %v2643_v4  ;;  %279 = vmatprep.subr.bf16.mxu0 %v2748_v0  ;;  %v17_v17 = vld [vmem:[%s3910_s0 + $0x28] sm:$0xff]  ;;  %v35_v21 = vmax.f32 %v2832_v18, 0.0  ;;  %v16_v27 = vld [vmem:[%s3910_s0 + $0x20] sm:$0xff]  ;;  %v2854_v28 = vld [vmem:[%s3910_s0 + $0x30] sm:$0xff]  ;;  %v2865_v31 = vmax.f32 %v14_v26, 0.0 }
   0x8   :  { %425 = vmatprep.subr.bf16.mxu1 %v2748_v0  ;;  %v2836_v20 = vmax.f32 %v17_v17, 0.0  ;;  %v77_v22 = vld [vmem:[%s3910_s0 + $0x8] sm:$0xfe]  ;;  %v2655_v29 = vld [vmem:[%s3909_s1] sm:$0xff]   ;;  %v2867_v32 = vmax.f32 %v16_v27, 0.0  ;;  %v34_v36 = vmax.f32 %v2854_v28, 0.0 }
   0x9   :  { %v13_v23 = vld [vmem:[%s3910_s0 + $0x8] sm:$0xff]  ;;  %v81_v24 = vmax.f32 %v77_v22, 0.0  ;;  %v76_v33 = vld [vmem:[%s3910_s0] sm:$0xfe]  ;;  %v2656_v38 = vld [vmem:[%s3909_s1 + $0xb8] sm:$0xff]  }
   0xa   :  { %280 = vmatpush1.bf16.msra.mxu0 %v2644_v5  ;;  %v29_v25 = vmax.f32 %v13_v23, 0.0  ;;  %v2863_v30 = vpack.c.bf16 %v35_v21, %v2836_v20  ;;  %v80_v37 = vmax.f32 %v76_v33, 0.0  ;;  %v2657_v43 = vld [vmem:[%s3909_s1 + $0x58] sm:$0xff]   ;;  %v2890_v46 = vpack.c.bf16 %v34_v36, %v2867_v32  ;;  %v2658_v47 = vld [vmem:[%s3909_s1 + $0xb0] sm:$0xff]   ;;  %v2660_v51 = vld [vmem:[%s3909_s1 + $0xa8] sm:$0xff]  }
   0xb   :  { %426 = vmatpush1.bf16.msra.mxu1 %v2645_v6  ;;  %281 = vmatprep.subr.bf16.mxu0 %v2748_v0  ;;  %v85_v34 = vpack.c.bf16 %v2834_v19, %v81_v24  ;;  %v2659_v49 = vld [vmem:[%s3909_s1 + $0x50] sm:$0xff]   ;;  %v12_v54 = vld [vmem:[%s3910_s0] sm:$0xff]  ;;  %v2661_v57 = vld [vmem:[%s3909_s1 + $0x48] sm:$0xff]  }
   0xc   :  { %427 = vmatprep.subr.bf16.mxu1 %v2748_v0  ;;  %v45_v35 = vpack.c.bf16 %v2834_v19, %v29_v25  ;;  %v134_v39 = vshll.u32 %v2863_v30, 16  ;;  %v84_v42 = vpack.c.bf16 %v2865_v31, %v80_v37  ;;  %v122_v53 = vshll.u32 %v2890_v46, 16  ;;  %v2917_v60 = vld [vmem:[%s3910_s0 + $0x48] sm:$0xff]  ;;  %v2922_v61 = vld [vmem:[%s3910_s0 + $0x58] sm:$0xff]  ;;  %v2927_v62 = vld [vmem:[%s3910_s0 + $0x40] sm:$0xff] }
   0xd   :  { %v127_v40 = vshrl.u32 %v85_v34, 16  ;;  %v129_v41 = vshll.u32 %v85_v34, 16  ;;  %v146_v58 = vshrl.u32 %v2863_v30, 16  ;;  %v28_v59 = vmax.f32 %v12_v54, 0.0  ;;  %v2935_v2 = vld [vmem:[%s3910_s0 + $0x50] sm:$0xff]  ;;  %v2975_v23 = vld [vmem:[%s3910_s0 + $0x78] sm:$0xff] }
   0xe   :  { %282 = vmatpush1.bf16.msra.mxu0 %v2646_v7  ;;  %2331 = vmatprep.mubr.msk.bf16.mxu1 %vm262_vm0, %v45_v35  ;;  %v136_v45 = vrot.slane %v134_v39, 1  ;;  %v117_v48 = vshll.u32 %v84_v42, 16  ;;  %v115_v55 = vshrl.u32 %v84_v42, 16  ;;  %v37_v63 = vmax.f32 %v2917_v60, 0.0  ;;  %v2662_v7 = vld [vmem:[%s3909_s1 + $0xa0] sm:$0xff]   ;;  %v2986_v26 = vld [vmem:[%s3910_s0 + $0x70] sm:$0xff] }
   0xf   :  { %428 = vmatpush1.bf16.msra.mxu1 %v2647_v8  ;;  %283 = vmatprep.subr.bf16.mxu0 %v2748_v0  ;;  %v131_v44 = vrot.slane %v129_v41, 1  ;;  %v39_v1 = vmax.f32 %v2922_v61, 0.0  ;;  %v36_v3 = vmax.f32 %v2927_v62, 0.0  ;;  %v124_v5 = vrot.slane %v122_v53, 1  ;;  %v2981_v25 = vld [vmem:[%s3910_s0 + $0x60] sm:$0xff]  ;;  %v2665_v35 = vld [vmem:[%s3909_s1 + $0x158] sm:$0xff]  }
  0x10   :  { %429 = vmatprep.subr.bf16.mxu1 %v2748_v0  ;;  %v119_v56 = vrot.slane %v117_v48, 1  ;;  %v38_v6 = vmax.f32 %v2935_v2, 0.0  ;;  %v138_v17 = vshrl.u32 %v2890_v46, 16  ;;  %v40_v33 = vmax.f32 %v2981_v25, 0.0  ;;  %v78_v48 = vld [vmem:[%s3910_s0 + $0x80] sm:$0x1] }
  0x11   :  { %v132_v50 = vor.u32 %v131_v44, %v127_v40  ;;  %v2946_v8 = vpack.c.bf16 %v39_v1, %v37_v63  ;;  %v42_v34 = vmax.f32 %v2986_v26, 0.0  ;;  %v2666_v40 = vld [vmem:[%s3909_s1 + $0xf0] sm:$0xff]   ;;  %v2685_v28 = vld [vmem:[%s3909_s1 + $0x168] sm:$0xff]   ;;  %v535_v61 = vrot.slane %v2890_v46, 1  ;;  %v2687_v2 = vld [vmem:[%s3909_s1 + $0x160] sm:$0xff]  }
  0x12   :  { %284 = vmatpush1.bf16.msra.mxu0 %v2648_v9  ;;  %v120_v4 = vor.u32 %v119_v56, %v115_v55  ;;  %v2663_v9 = vld [vmem:[%s3909_s1 + $0x40] sm:$0xff]   ;;  %v140_v41 = vor.u32 %v138_v17, %v124_v5  ;;  %v2692_v26 = vld [vmem:[%s3909_s1 + $0x1a8] sm:$0xff]  }
  0x13   :  { %430 = vmatpush1.bf16.msra.mxu1 %v2649_v10  ;;  %285 = vmatprep.subr.bf16.mxu0 %v2748_v0  ;;  %v137_v52 = vsel %vm113_vm1, %v132_v50, %v136_v45  ;;  %v2956_v10 = vpack.c.bf16 %v38_v6, %v36_v3  ;;  %v162_v39 = vshrl.u32 %v2946_v8, 16  ;;  %v3012_v44 = vpack.c.bf16 %v42_v34, %v40_v33 }
  0x14   :  { %431 = vmatprep.subr.bf16.mxu1 %v2748_v0  ;;  %2315 = vmatprep.mubr.msk.bf16.mxu0 %vm262_vm0, %v137_v52  ;;  %v125_v16 = vsel %vm113_vm1, %v120_v4, %v124_v5  ;;  %v82_v52 = vmax.f32 %v78_v48, 0.0  ;;  %v542_v25 = vrot.slane %v2946_v8, 1 }
  0x15   :  { %v142_v22 = vshll.u32 %v2956_v10, 16  ;;  %v154_v55 = vshrl.u32 %v2956_v10, 16  ;;  %v158_v56 = vshll.u32 %v3012_v44, 16  ;;  %v170_v18 = vshrl.u32 %v3012_v44, 16 }
  0x16   :  { %286 = vmatpush1.bf16.msra.mxu0 %v2650_v11  ;;  %v148_v11 = vor.u32 %v146_v58, %v136_v45  ;;  %v2667_v45 = vld [vmem:[%s3909_s1 + $0x150] sm:$0xff]   ;;  %v2669_v58 = vld [vmem:[%s3909_s1 + $0x148] sm:$0xff]  }
  0x17   :  { %432 = vmatpush1.bf16.msra.mxu1 %v2651_v12  ;;  %287 = vmatprep.subr.bf16.mxu0 %v2748_v0  ;;  %v44_v12 = vpack.c.bf16 %v2865_v31, %v28_v59  ;;  %v144_v42 = vrot.slane %v142_v22, 1  ;;  %v86_v59 = vpack.c.bf16 %v82_v52, %v82_v52  ;;  %v2675_v52 = vld [vmem:[%s3909_s1 + $0x130] sm:$0xff]  }
  0x18   :  { %433 = vmatprep.subr.bf16.mxu1 %v2748_v0 }
  0x19   :  { %v145_v54 = vsel %vm113_vm1, %v140_v41, %v144_v42  ;;  %v174_v22 = vshll.u32 %v86_v59, 16  ;;  %v2672_v41 = vld [vmem:[%s3909_s1 + $0xd8] sm:$0xff]   ;;  %v713_v59 = vld [vmem:[%s3910_s0 + $0x10] sm:$0xfe] }
  0x1a   :  { %288 = vmatpush1.bf16.msra.mxu0 %v2652_v13  ;;  %v2664_v13 = vld [vmem:[%s3909_s1 + $0xf8] sm:$0xff]  }
  0x1b   :  { %434 = vmatpush1.bf16.msra.mxu1 %v2653_v14  ;;  %289 = vmatprep.subr.bf16.mxu0 %v2748_v0  ;;  %v150_v14 = vshll.u32 %v2946_v8, 16 }
  0x1c   :  { %435 = vmatprep.subr.bf16.mxu1 %v2748_v0 }
  0x1d   :  { %v152_v27 = vrot.slane %v150_v14, 1  ;;  %v714_v14 = vld [vmem:[%s3910_s0 + $0x18] sm:$0xfe] }
  0x1e   :  { %290 = vmatpush1.bf16.msra.mxu0 %v2654_v15  ;;  %v2967_v15 = vld [vmem:[%s3910_s0 + $0x68] sm:$0xff]  ;;  %v732_v17 = vmax.f32 %v714_v14, 0.0  ;;  %v486_v14 = vld [vmem:[%s3910_s0] sm:$0xfc] }
  0x1f   :  { %436 = vmatpush1.bf16.msra.mxu1 %v2655_v29  ;;  %299 = vmatprep.subr.bf16.mxu0 %v2748_v0  ;;  %v41_v24 = vmax.f32 %v2967_v15, 0.0  ;;  %v43_v29 = vmax.f32 %v2975_v23, 0.0  ;;  %v164_v53 = vor.u32 %v162_v39, %v152_v27  ;;  %v2690_v23 = vld [vmem:[%s3909_s1 + $0x1b0] sm:$0xff]  }
  0x20   :  { %445 = vmatprep.subr.bf16.mxu1 %v2748_v0 }
  0x21   :  { %v3000_v37 = vpack.c.bf16 %v43_v29, %v41_v24 }
  0x22   :  { %300 = vmatpush2.bf16.msra.mxu0 %v2656_v38  ;;  %v153_v38 = vsel %vm113_vm1, %v148_v11, %v152_v27  ;;  %v156_v11 = vor.u32 %v154_v55, %v144_v42  ;;  %v3061_v27 = vpack.c.bf16 %v37_v63, %v35_v21  ;;  %v2673_v21 = vld [vmem:[%s3909_s1 + $0x138] sm:$0xff]   ;;  %v2674_v63 = vld [vmem:[%s3909_s1 + $0xd0] sm:$0xff]  }
  0x23   :  { %446 = vmatpush2.bf16.msra.mxu1 %v2657_v43  ;;  %301 = vmatprep.subr.bf16.mxu0 %v2748_v0  ;;  %v166_v43 = vshll.u32 %v3000_v37, 16  ;;  %v178_v5 = vshrl.u32 %v3000_v37, 16 }
  0x24   :  { %447 = vmatprep.subr.bf16.mxu1 %v2748_v0  ;;  %v804_v48 = vshll.u32 %v3061_v27, 16 }
  0x25   :  { %v168_v50 = vrot.slane %v166_v43, 1 }
  0x26   :  { %302 = vmatpush2.bf16.msra.mxu0 %v2658_v47  ;;  %v79_v47 = vld [vmem:[%s3910_s0 + $0x88] sm:$0x1] }
  0x27   :  { %448 = vmatpush2.bf16.msra.mxu1 %v2659_v49  ;;  %303 = vmatprep.subr.bf16.mxu0 %v2748_v0  ;;  %v2668_v49 = vld [vmem:[%s3909_s1 + $0xe8] sm:$0xff]   ;;  %v169_v4 = vsel %vm113_vm1, %v164_v53, %v168_v50  ;;  %v538_v53 = vrot.slane %v2863_v30, 1 }
  0x28   :  { %449 = vmatprep.subr.bf16.mxu1 %v2748_v0 }
  0x2a   :  { %304 = vmatpush2.bf16.msra.mxu0 %v2660_v51  ;;  %v83_v51 = vmax.f32 %v79_v47, 0.0 }
  0x2b   :  { %450 = vmatpush2.bf16.msra.mxu1 %v2661_v57  ;;  %305 = vmatprep.subr.bf16.mxu0 %v2748_v0 }
  0x2c   :  { %451 = vmatprep.subr.bf16.mxu1 %v2748_v0  ;;  %v87_v57 = vpack.c.bf16 %v83_v51, %v83_v51 }
  0x2e   :  { %306 = vmatpush2.bf16.msra.mxu0 %v2662_v7  ;;  %v182_v7 = vshll.u32 %v87_v57, 16  ;;  %v3098_v57 = vrot.slane %v804_v48, 1 }
  0x2f   :  { %452 = vmatpush2.bf16.msra.mxu1 %v2663_v9  ;;  %640 = vmatprep.subr.bf16.mxu0 %v2748_v0  ;;  %v2670_v9 = vld [vmem:[%s3909_s1 + $0xe0] sm:$0xff]  }
  0x30   :  { %944 = vmatprep.subr.bf16.mxu1 %v2748_v0 }
  0x31   :  { %308 = vmatmul.mubr.bf16.vlgmr.msra.gmra.mxu0 %v125_v16  ;;  %v2671_v16 = vld [vmem:[%s3909_s1 + $0x140] sm:$0xff]  }
  0x32   :  { %454 = vmatmul.mubr.bf16.vlgmr.msra.gmra.mxu1 %v44_v12  ;;  %641 = vmatpush1.bf16.msra.mxu0 %v2664_v13  ;;  %v160_v12 = vrot.slane %v158_v56, 1  ;;  %v487_v13 = vld [vmem:[%s3910_s0 + $0x8] sm:$0xfc] }
  0x33   :  { %945 = vmatpush1.bf16.msra.mxu1 %v2665_v35  ;;  %642 = vmatprep.subr.bf16.mxu0 %v2748_v0  ;;  %v180_v35 = vor.u32 %v178_v5, %v168_v50  ;;  %v491_v39 = vmax.f32 %v487_v13, 0.0  ;;  %v2678_v5 = vld [vmem:[%s3909_s1 + $0xc0] sm:$0xff]   ;;  %v2681_v13 = vld [vmem:[%s3909_s1 + $0x178] sm:$0xff]  }
  0x34   :  { %946 = vmatprep.subr.bf16.mxu1 %v2748_v0  ;;  %2316 = vmatprep.mubr.msk.bf16.mxu0 %vm262_vm0, %v153_v38  ;;  %v184_v38 = vrot.slane %v182_v7, 1  ;;  %v161_v42 = vsel %vm113_vm1, %v156_v11, %v160_v12  ;;  %v731_v11 = vmax.f32 %v713_v59, 0.0 }
  0x35   :  { %2332 = vmatprep.mubr.msk.bf16.mxu1 %vm262_vm0, %v2863_v30  ;;  %v495_v47 = vpack.c.bf16 %v2834_v19, %v491_v39  ;;  %v488_v30 = vld [vmem:[%s3910_s0 + $0x80] sm:$0x3] }
  0x36   :  { %643 = vmatpush1.bf16.msra.mxu0 %v2666_v40  ;;  %v750_v40 = vpack.c.bf16 %v2836_v20, %v732_v17  ;;  %v185_v43 = vsel %vm113_vm1, %v180_v35, %v184_v38  ;;  %v2682_v17 = vld [vmem:[%s3909_s1 + $0x110] sm:$0xff]   ;;  %v3143_v35 = vpack.c.bf16 %v36_v3, %v34_v36 }
  0x37   :  { %947 = vmatpush1.bf16.msra.mxu1 %v2667_v45  ;;  %644 = vmatprep.subr.bf16.mxu0 %v2748_v0  ;;  %v176_v45 = vrot.slane %v174_v22, 1  ;;  %v537_v19 = vrot.slane %v495_v47, 1  ;;  %v490_v22 = vmax.f32 %v486_v14, 0.0  ;;  %v2683_v38 = vld [vmem:[%s3909_s1 + $0x170] sm:$0xff]  }
  0x38   :  { %948 = vmatprep.subr.bf16.mxu1 %v2748_v0  ;;  %v799_v60 = vshll.u32 %v750_v40, 16  ;;  %v797_v50 = vshrl.u32 %v750_v40, 16  ;;  %v2684_v40 = vld [vmem:[%s3909_s1 + $0x108] sm:$0xff]   ;;  %v792_v3 = vshll.u32 %v3143_v35, 16 }
  0x39   :  { %316 = vmatmul.mubr.bf16.gmra.mxu0 %v145_v54  ;;  %v2676_v54 = vld [vmem:[%s3909_s1 + $0xc8] sm:$0xff]   ;;  %v494_v36 = vpack.c.bf16 %v2865_v31, %v490_v22  ;;  %v3175_v31 = vpack.c.bf16 %v40_v33, %v38_v6  ;;  %v2688_v33 = vld [vmem:[%s3909_s1 + $0x1b8] sm:$0xff]  }
  0x3a   :  { %645 = vmatpush1.bf16.msra.mxu0 %v2668_v49  ;;  %462 = vmatmul.mubr.bf16.gmra.mxu1 %v2890_v46  ;;  %v172_v49 = vor.u32 %v170_v18, %v160_v12  ;;  %v801_v51 = vrot.slane %v799_v60, 1  ;;  %v2680_v12 = vld [vmem:[%s3909_s1 + $0x118] sm:$0xff]   ;;  %v3168_v18 = vld [vmem:[%s3910_s0 + $0x88] sm:$0xff]  ;;  %v794_v6 = vrot.slane %v792_v3, 1 }
  0x3b   :  { %949 = vmatpush1.bf16.msra.mxu1 %v2669_v58  ;;  %646 = vmatprep.subr.bf16.mxu0 %v2748_v0  ;;  %v2677_v58 = vld [vmem:[%s3909_s1 + $0x128] sm:$0xff]   ;;  %v534_v15 = vrot.slane %v494_v36, 1  ;;  %v746_v60 = vmax.f32 %v3168_v18, 0.0  ;;  %v824_v14 = vshrl.u32 %v3175_v31, 16 }
  0x3c   :  { %950 = vmatprep.subr.bf16.mxu1 %v2748_v0  ;;  %2317 = vmatprep.mubr.msk.bf16.mxu0 %vm262_vm0, %v169_v4  ;;  %v177_v55 = vsel %vm113_vm1, %v172_v49, %v176_v45  ;;  %v802_v56 = vor.u32 %v801_v51, %v797_v50  ;;  %v539_v4 = vsel %vm533_vm2, %v537_v19, %v538_v53 }
  0x3d   :  { %2333 = vmatprep.mubr.msk.bf16.mxu1 %vm262_vm0, %v2946_v8  ;;  %v536_v45 = vsel %vm533_vm2, %v534_v15, %v535_v61  ;;  %v2689_v8 = vld [vmem:[%s3909_s1 + $0x218] sm:$0xff]   ;;  %v3214_v50 = vpack.c.bf16 %v746_v60, %v43_v29  ;;  %v540_v29 = vrot.slane %v2956_v10, 1  ;;  %v2694_v15 = vld [vmem:[%s3909_s1 + $0x1a0] sm:$0xff]  }
  0x3e   :  { %647 = vmatpush1.bf16.msra.mxu0 %v2670_v9  ;;  %v807_v7 = vsel %vm113_vm1, %v802_v56, %v3098_v57  ;;  %v2679_v9 = vld [vmem:[%s3909_s1 + $0x120] sm:$0xff]   ;;  %v2691_v56 = vld [vmem:[%s3909_s1 + $0x210] sm:$0xff]  }
  0x3f   :  { %951 = vmatpush1.bf16.msra.mxu1 %v2671_v16  ;;  %648 = vmatprep.subr.bf16.mxu0 %v2748_v0  ;;  %v749_v16 = vpack.c.bf16 %v2867_v32, %v731_v11  ;;  %v729_v11 = vld [vmem:[%s3910_s0 + $0x90] sm:$0x1] }
  0x40   :  { %952 = vmatprep.subr.bf16.mxu1 %v2748_v0 }
  0x41   :  { %324 = vmatmul.mubr.bf16.gmra.mxu0 %v161_v42  ;;  %v787_v39 = vshll.u32 %v749_v16, 16  ;;  %v785_v62 = vshrl.u32 %v749_v16, 16 }
  0x42   :  { %649 = vmatpush1.bf16.msra.mxu0 %v2672_v41  ;;  %470 = vmatmul.mubr.bf16.gmra.mxu1 %v2956_v10  ;;  %v3162_v41 = vpack.c.bf16 %v41_v24, %v39_v1  ;;  %v2686_v1 = vld [vmem:[%s3909_s1 + $0x100] sm:$0xff]   ;;  %v816_v24 = vshrl.u32 %v3061_v27, 16  ;;  %v489_v10 = vld [vmem:[%s3910_s0 + $0x88] sm:$0x3] }
  0x43   :  { %953 = vmatpush1.bf16.msra.mxu1 %v2673_v21  ;;  %650 = vmatprep.subr.bf16.mxu0 %v2748_v0  ;;  %v789_v42 = vrot.slane %v787_v39, 1  ;;  %v493_v16 = vmax.f32 %v489_v10, 0.0 }
  0x44   :  { %954 = vmatprep.subr.bf16.mxu1 %v2748_v0  ;;  %2318 = vmatprep.mubr.msk.bf16.mxu0 %vm262_vm0, %v185_v43  ;;  %v820_v21 = vshll.u32 %v3162_v41, 16  ;;  %v3199_v43 = vld [vmem:[%s3910_s0 + $0x80] sm:$0xff]  ;;  %v818_v47 = vor.u32 %v816_v24, %v3098_v57  ;;  %v543_v57 = vsel %vm533_vm2, %v538_v53, %v542_v25  ;;  %v832_v59 = vshrl.u32 %v3162_v41, 16 }
  0x45   :  { %2334 = vmatprep.mubr.msk.bf16.mxu1 %vm262_vm0, %v3000_v37  ;;  %v790_v46 = vor.u32 %v789_v42, %v785_v62  ;;  %v745_v19 = vmax.f32 %v3199_v43, 0.0  ;;  %v747_v62 = vmax.f32 %v729_v11, 0.0  ;;  %v2712_v43 = vld [vmem:[%s3909_s1 + $0x278] sm:$0xff]  }
  0x46   :  { %651 = vmatpush1.bf16.msra.mxu0 %v2674_v63  ;;  %v812_v63 = vshll.u32 %v3175_v31, 16  ;;  %v822_v49 = vrot.slane %v820_v21, 1 }
  0x47   :  { %955 = vmatpush1.bf16.msra.mxu1 %v2675_v52  ;;  %652 = vmatprep.subr.bf16.mxu0 %v2748_v0  ;;  %v795_v51 = vsel %vm113_vm1, %v790_v46, %v794_v6  ;;  %v808_v52 = vshrl.u32 %v3143_v35, 16  ;;  %v848_v46 = vshrl.u32 %v3214_v50, 16 }
  0x48   :  { %956 = vmatprep.subr.bf16.mxu1 %v2748_v0 }
  0x49   :  { %332 = vmatmul.mubr.bf16.gmra.mxu0 %v177_v55  ;;  %v814_v55 = vrot.slane %v812_v63, 1  ;;  %v810_v53 = vor.u32 %v808_v52, %v794_v6 }
  0x4a   :  { %653 = vmatpush1.bf16.msra.mxu0 %v2676_v54  ;;  %478 = vmatmul.mubr.bf16.gmra.mxu1 %v3012_v44  ;;  %v730_v54 = vld [vmem:[%s3910_s0 + $0x98] sm:$0x1] }
  0x4b   :  { %957 = vmatpush1.bf16.msra.mxu1 %v2677_v58  ;;  %654 = vmatprep.subr.bf16.mxu0 %v2748_v0  ;;  %v546_v58 = vrot.slane %v3000_v37, 1  ;;  %v2699_v37 = vld [vmem:[%s3909_s1 + $0x1f0] sm:$0xff]  }
  0x4c   :  { %958 = vmatprep.subr.bf16.mxu1 %v2748_v0  ;;  %2371 = vmatprep.mubr.msk.bf16.mxu0 %vm262_vm0, %v539_v4  ;;  %v823_v4 = vsel %vm113_vm1, %v818_v47, %v822_v49 }
  0x4d   :  { %2411 = vmatprep.mubr.msk.bf16.mxu1 %vm262_vm0, %v807_v7  ;;  %v748_v7 = vmax.f32 %v730_v54, 0.0  ;;  %v547_v42 = vsel %vm533_vm2, %v542_v25, %v546_v58 }
  0x4e   :  { %655 = vmatpush1.bf16.msra.mxu0 %v2678_v5  ;;  %v836_v5 = vshll.u32 %v3214_v50, 16 }
  0x4f   :  { %959 = vmatpush1.bf16.msra.mxu1 %v2679_v9  ;;  %664 = vmatprep.subr.bf16.mxu0 %v2748_v0  ;;  %v3253_v9 = vpack.c.bf16 %v745_v19, %v42_v34  ;;  %v834_v34 = vor.u32 %v832_v59, %v822_v49  ;;  %v758_v39 = vpack.c.bf16 %v748_v7, %v748_v7 }
  0x50   :  { %968 = vmatprep.subr.bf16.mxu1 %v2748_v0  ;;  %v838_v22 = vrot.slane %v836_v5, 1  ;;  %v757_v49 = vpack.c.bf16 %v747_v62, %v747_v62  ;;  %v1318_v18 = vrot.slane %v836_v5, 2  ;;  %v1763_v5 = vld [vmem:[%s3910_s0 + $0xa8] sm:$0x7] }
  0x51   :  { %v828_v36 = vshll.u32 %v3253_v9, 16  ;;  %v852_v6 = vshll.u32 %v758_v39, 16  ;;  %v1068_v39 = vrot.slane %v3061_v27, 1 }
  0x52   :  { %665 = vmatpush2.bf16.msra.mxu0 %v2680_v12  ;;  %v1244_v12 = vld [vmem:[%s3910_s0 + $0x18] sm:$0xf8]  ;;  %v844_v11 = vshll.u32 %v757_v49, 16 }
  0x53   :  { %969 = vmatpush2.bf16.msra.mxu1 %v2681_v13  ;;  %666 = vmatprep.subr.bf16.mxu0 %v2748_v0  ;;  %v541_v13 = vsel %vm533_vm2, %v535_v61, %v540_v29  ;;  %v544_v61 = vrot.slane %v3012_v44, 1  ;;  %v2695_v44 = vld [vmem:[%s3909_s1 + $0x200] sm:$0xff]   ;;  %v2705_v49 = vld [vmem:[%s3909_s1 + $0x238] sm:$0xff]  }
  0x54   :  { %970 = vmatprep.subr.bf16.mxu1 %v2748_v0 }
  0x56   :  { %667 = vmatpush2.bf16.msra.mxu0 %v2682_v17  ;;  %v2693_v17 = vld [vmem:[%s3909_s1 + $0x208] sm:$0xff]  }
  0x57   :  { %971 = vmatpush2.bf16.msra.mxu1 %v2683_v38  ;;  %668 = vmatprep.subr.bf16.mxu0 %v2748_v0  ;;  %v492_v38 = vmax.f32 %v488_v30, 0.0 }
  0x58   :  { %972 = vmatprep.subr.bf16.mxu1 %v2748_v0 }
  0x59   :  { %v496_v47 = vpack.c.bf16 %v492_v38, %v492_v38 }
  0x5a   :  { %669 = vmatpush2.bf16.msra.mxu0 %v2684_v40  ;;  %v1248_v40 = vmax.f32 %v1244_v12, 0.0  ;;  %v2698_v12 = vld [vmem:[%s3909_s1 + $0x190] sm:$0xff]  }
  0x5b   :  { %973 = vmatpush2.bf16.msra.mxu1 %v2685_v28  ;;  %670 = vmatprep.subr.bf16.mxu0 %v2748_v0  ;;  %v815_v28 = vsel %vm113_vm1, %v810_v53, %v814_v55  ;;  %v548_v7 = vrot.slane %v496_v47, 1  ;;  %v840_v53 = vshrl.u32 %v3253_v9, 16  ;;  %v2704_v47 = vld [vmem:[%s3909_s1 + $0x1d8] sm:$0xff]  }
  0x5c   :  { %974 = vmatprep.subr.bf16.mxu1 %v2748_v0  ;;  %v1252_v25 = vpack.c.bf16 %v2836_v20, %v1248_v40 }
  0x5d   :  { %v549_v40 = vsel %vm533_vm2, %v544_v61, %v548_v7 }
  0x5e   :  { %671 = vmatpush2.bf16.msra.mxu0 %v2686_v1  ;;  %v497_v1 = vpack.c.bf16 %v493_v16, %v493_v16  ;;  %v1294_v10 = vshrl.u32 %v1252_v25, 16  ;;  %v1302_v16 = vrot.slane %v804_v48, 2  ;;  %v1243_v48 = vld [vmem:[%s3910_s0 + $0x10] sm:$0xf8] }
  0x5f   :  { %975 = vmatpush2.bf16.msra.mxu1 %v2687_v2  ;;  %1170 = vmatprep.subr.bf16.mxu0 %v2748_v0  ;;  %v839_v2 = vsel %vm113_vm1, %v834_v34, %v838_v22  ;;  %v1301_v34 = vrot.slane %v816_v24, 1  ;;  %v846_v24 = vrot.slane %v844_v11, 1  ;;  %v1065_v11 = vrot.slane %v3143_v35, 1 }
  0x60   :  { %1427 = vmatprep.subr.bf16.mxu1 %v2748_v0  ;;  %v550_v54 = vrot.slane %v497_v1, 1  ;;  %v2701_v1 = vld [vmem:[%s3909_s1 + $0x1e8] sm:$0xff]  }
  0x61   :  { %673 = vmatmul.mubr.bf16.vlgmr.msra.gmra.mxu0 %v536_v45  ;;  %v826_v45 = vor.u32 %v824_v14, %v814_v55  ;;  %v2696_v55 = vld [vmem:[%s3909_s1 + $0x198] sm:$0xff]  }
  0x62   :  { %977 = vmatmul.mubr.bf16.vlgmr.msra.gmra.mxu1 %v795_v51  ;;  %1171 = vmatpush1.bf16.msra.mxu0 %v2688_v33  ;;  %v1018_v33 = vld [vmem:[%s3910_s0 + $0x18] sm:$0xfc]  ;;  %v545_v51 = vsel %vm533_vm2, %v540_v29, %v544_v61  ;;  %v1017_v61 = vld [vmem:[%s3910_s0 + $0x10] sm:$0xfc] }
  0x63   :  { %1428 = vmatpush1.bf16.msra.mxu1 %v2689_v8  ;;  %1172 = vmatprep.subr.bf16.mxu0 %v2748_v0  ;;  %v830_v8 = vrot.slane %v828_v36, 1  ;;  %v2697_v29 = vld [vmem:[%s3909_s1 + $0x1f8] sm:$0xff]  }
  0x64   :  { %1429 = vmatprep.subr.bf16.mxu1 %v2748_v0  ;;  %2372 = vmatprep.mubr.msk.bf16.mxu0 %vm262_vm0, %v543_v57  ;;  %v854_v57 = vrot.slane %v852_v6, 1 }
  0x65   :  { %2412 = vmatprep.mubr.msk.bf16.mxu1 %vm262_vm0, %v823_v4  ;;  %v1297_v4 = vshll.u32 %v1252_v25, 16  ;;  %v831_v30 = vsel %vm113_vm1, %v826_v45, %v830_v8  ;;  %v1021_v45 = vmax.f32 %v1017_v61, 0.0 }
  0x66   :  { %1173 = vmatpush1.bf16.msra.mxu0 %v2690_v23  ;;  %v1022_v23 = vmax.f32 %v1018_v33, 0.0  ;;  %v2702_v33 = vld [vmem:[%s3909_s1 + $0x180] sm:$0xff]  }
  0x67   :  { %1430 = vmatpush1.bf16.msra.mxu1 %v2691_v56  ;;  %1174 = vmatprep.subr.bf16.mxu0 %v2748_v0  ;;  %v850_v56 = vor.u32 %v848_v46, %v838_v22  ;;  %v1296_v22 = vrot.slane %v1294_v10, 1  ;;  %v1299_v38 = vrot.slane %v1297_v4, 2  ;;  %v1508_v10 = vld [vmem:[%s3910_s0 + $0x60] sm:$0xff] }
  0x68   :  { %1431 = vmatprep.subr.bf16.mxu1 %v2748_v0 }
  0x69   :  { %681 = vmatmul.mubr.bf16.gmra.mxu0 %v541_v13  ;;  %v1026_v13 = vpack.c.bf16 %v2836_v20, %v1022_v23  ;;  %v842_v20 = vor.u32 %v840_v53, %v830_v8  ;;  %v1300_v62 = vor.u32 %v1299_v38, %v1296_v22  ;;  %v2706_v23 = vld [vmem:[%s3909_s1 + $0x1d0] sm:$0xff]  }
  0x6a   :  { %1175 = vmatpush1.bf16.msra.mxu0 %v2692_v26  ;;  %985 = vmatmul.mubr.bf16.gmra.mxu1 %v815_v28  ;;  %v551_v26 = vsel %vm533_vm2, %v546_v58, %v550_v54  ;;  %v2700_v28 = vld [vmem:[%s3909_s1 + $0x188] sm:$0xff]   ;;  %v1514_v22 = vld [vmem:[%s3910_s0 + $0x90] sm:$0xff] }
  0x6b   :  { %1432 = vmatpush1.bf16.msra.mxu1 %v2693_v17  ;;  %1176 = vmatprep.subr.bf16.mxu0 %v2748_v0  ;;  %v855_v17 = vsel %vm113_vm1, %v850_v56, %v854_v57  ;;  %v1067_v58 = vrot.slane %v1026_v13, 1  ;;  %v1509_v54 = vld [vmem:[%s3910_s0 + $0x68] sm:$0xff]  ;;  %v1289_v56 = vrot.slane %v808_v52, 1  ;;  %v2707_v57 = vld [vmem:[%s3909_s1 + $0x230] sm:$0xff]  }
  0x6c   :  { %1433 = vmatprep.subr.bf16.mxu1 %v2748_v0  ;;  %2373 = vmatprep.mubr.msk.bf16.mxu0 %vm262_vm0, %v547_v42  ;;  %v3346_v42 = vor.u32 %v1302_v16, %v1301_v34  ;;  %v1510_v52 = vld [vmem:[%s3910_s0 + $0x70] sm:$0xff]  ;;  %v1070_v34 = vrot.slane %v3175_v31, 1  ;;  %v2721_v31 = vld [vmem:[%s3909_s1 + $0x2b8] sm:$0xff]  }
  0x6d   :  { %2413 = vmatprep.mubr.msk.bf16.mxu1 %vm262_vm0, %v839_v2  ;;  %v1247_v2 = vmax.f32 %v1243_v48, 0.0  ;;  %v1069_v6 = vsel %vm533_vm2, %v1067_v58, %v1068_v39  ;;  %v1528_v38 = vmax.f32 %v1510_v52, 0.0  ;;  %v1532_v58 = vmax.f32 %v1514_v22, 0.0 }
  0x6e   :  { %1177 = vmatpush1.bf16.msra.mxu0 %v2694_v15  ;;  %v847_v15 = vsel %vm113_vm1, %v842_v20, %v846_v24  ;;  %v1304_v25 = vsel %vm1280_vm3, %v1300_v62, %v3346_v42  ;;  %v1310_v62 = vrot.slane %v820_v21, 2  ;;  %v3507_v52 = vsel %vm533_vm2, %v1065_v11, %v1070_v34 }
  0x6f   :  { %1434 = vmatpush1.bf16.msra.mxu1 %v2695_v44  ;;  %1178 = vmatprep.subr.bf16.mxu0 %v2748_v0  ;;  %v2703_v44 = vld [vmem:[%s3909_s1 + $0x1e0] sm:$0xff]   ;;  %v1251_v8 = vpack.c.bf16 %v2867_v32, %v1247_v2 }
  0x70   :  { %1435 = vmatprep.subr.bf16.mxu1 %v2748_v0  ;;  %v2710_v2 = vld [vmem:[%s3909_s1 + $0x1c0] sm:$0xff]  }
  0x71   :  { %689 = vmatmul.mubr.bf16.gmra.mxu0 %v545_v51  ;;  %v3381_v51 = vpack.c.bf16 %v2867_v32, %v1021_v45  ;;  %v1511_v32 = vld [vmem:[%s3910_s0 + $0x78] sm:$0xff]  ;;  %v1285_v4 = vshll.u32 %v1251_v8, 16 }
  0x72   :  { %1179 = vmatpush1.bf16.msra.mxu0 %v2696_v55  ;;  %993 = vmatmul.mubr.bf16.gmra.mxu1 %v831_v30  ;;  %v1282_v55 = vshrl.u32 %v1251_v8, 16  ;;  %v1527_v30 = vmax.f32 %v1509_v54, 0.0  ;;  %v1529_v16 = vmax.f32 %v1511_v32, 0.0  ;;  %v1317_v8 = vrot.slane %v848_v46, 1 }
  0x73   :  { %1436 = vmatpush1.bf16.msra.mxu1 %v2697_v29  ;;  %1180 = vmatprep.subr.bf16.mxu0 %v2748_v0  ;;  %v1290_v29 = vrot.slane %v792_v3, 2  ;;  %v1064_v7 = vrot.slane %v3381_v51, 1  ;;  %v2708_v3 = vld [vmem:[%s3909_s1 + $0x1c8] sm:$0xff]   ;;  %v1287_v20 = vrot.slane %v1285_v4, 2 }
  0x74   :  { %1437 = vmatprep.subr.bf16.mxu1 %v2748_v0  ;;  %2374 = vmatprep.mubr.msk.bf16.mxu0 %vm262_vm0, %v551_v26  ;;  %v1515_v26 = vld [vmem:[%s3910_s0 + $0x98] sm:$0xff]  ;;  %v3417_v13 = vrot.slane %v1282_v55, 1  ;;  %v3425_v48 = vpack.c.bf16 %v1529_v16, %v1527_v30 }
  0x75   :  { %2414 = vmatprep.mubr.msk.bf16.mxu1 %vm262_vm0, %v855_v17  ;;  %v1526_v17 = vmax.f32 %v1508_v10, 0.0  ;;  %v3423_v24 = vor.u32 %v1290_v29, %v1289_v56  ;;  %v1762_v56 = vld [vmem:[%s3910_s0 + $0xa0] sm:$0x7]  ;;  %v1066_v30 = vsel %vm533_vm2, %v1064_v7, %v1065_v11  ;;  %v1245_v11 = vld [vmem:[%s3910_s0 + $0x90] sm:$0x7] }
  0x76   :  { %1181 = vmatpush1.bf16.msra.mxu0 %v2698_v12  ;;  %v1072_v12 = vrot.slane %v3162_v41, 1  ;;  %v1841_v21 = vshrl.u32 %v3425_v48, 16  ;;  %v2718_v41 = vld [vmem:[%s3909_s1 + $0x260] sm:$0xff]  }
  0x77   :  { %1438 = vmatpush1.bf16.msra.mxu1 %v2699_v37  ;;  %1182 = vmatprep.subr.bf16.mxu0 %v2748_v0  ;;  %v1533_v37 = vmax.f32 %v1515_v26, 0.0  ;;  %v3440_v61 = vpack.c.bf16 %v1528_v38, %v1526_v17  ;;  %v3512_v26 = vld [vmem:[%s3910_s0 + $0x98] sm:$0x3]  ;;  %v1767_v38 = vmax.f32 %v1763_v5, 0.0 }
  0x78   :  { %1439 = vmatprep.subr.bf16.mxu1 %v2748_v0  ;;  %v1073_v54 = vsel %vm533_vm2, %v1068_v39, %v1072_v12  ;;  %v1843_v46 = vrot.slane %v1841_v21, 1  ;;  %v1024_v21 = vmax.f32 %v3512_v26, 0.0 }
  0x79   :  { %697 = vmatmul.mubr.bf16.gmra.mxu0 %v549_v40  ;;  %v2709_v40 = vld [vmem:[%s3909_s1 + $0x228] sm:$0xff]   ;;  %v1835_v45 = vshll.u32 %v3440_v61, 16 }
  0x7a   :  { %1183 = vmatpush1.bf16.msra.mxu0 %v2700_v28  ;;  %1001 = vmatmul.mubr.bf16.gmra.mxu1 %v847_v15  ;;  %v1309_v28 = vrot.slane %v832_v59, 1  ;;  %v1246_v15 = vld [vmem:[%s3910_s0 + $0x98] sm:$0x7]  ;;  %v1306_v59 = vrot.slane %v812_v63, 2  ;;  %v2711_v63 = vld [vmem:[%s3909_s1 + $0x220] sm:$0xff]  }
  0x7b   :  { %1440 = vmatpush1.bf16.msra.mxu1 %v2701_v1  ;;  %1184 = vmatprep.subr.bf16.mxu0 %v2748_v0  ;;  %v1305_v1 = vrot.slane %v824_v14, 1  ;;  %v3452_v14 = vpack.c.bf16 %v1533_v37, %v746_v60  ;;  %v1250_v60 = vmax.f32 %v1246_v15, 0.0  ;;  %v1837_v10 = vrot.slane %v1835_v45, 2  ;;  %v1761_v45 = vld [vmem:[%s3910_s0 + $0x28] sm:$0xf8] }
  0x7c   :  { %1441 = vmatprep.subr.bf16.mxu1 %v2748_v0  ;;  %2451 = vmatprep.mubr.msk.bf16.mxu0 %vm262_vm0, %v1069_v6  ;;  %v1844_v6 = vshll.u32 %v3425_v48, 16  ;;  %v1766_v37 = vmax.f32 %v1762_v56, 0.0  ;;  %v1313_v15 = vrot.slane %v840_v53, 1  ;;  %v2715_v53 = vld [vmem:[%s3909_s1 + $0x2d0] sm:$0xff]  }
  0x7d   :  { %2491 = vmatprep.mubr.msk.bf16.mxu1 %vm262_vm0, %v1304_v25  ;;  %v1074_v25 = vrot.slane %v3253_v9, 1  ;;  %v3485_v55 = vor.u32 %v1306_v59, %v1305_v1  ;;  %v1859_v27 = vshrl.u32 %v3452_v14, 16  ;;  %v1862_v39 = vshll.u32 %v3452_v14, 16  ;;  %v1502_v9 = vld [vmem:[%s3910_s0 + $0x30] sm:$0xff] }
  0x7e   :  { %1185 = vmatpush1.bf16.msra.mxu0 %v2702_v33  ;;  %v1076_v33 = vrot.slane %v3214_v50, 1  ;;  %v3517_v7 = vpack.c.bf16 %v1250_v60, %v1250_v60  ;;  %v3540_v1 = vor.u32 %v1318_v18, %v1317_v8  ;;  %v1771_v59 = vpack.c.bf16 %v1767_v38, %v1767_v38  ;;  %v2723_v50 = vld [vmem:[%s3909_s1 + $0x2b0] sm:$0xff]  }
  0x7f   :  { %1442 = vmatpush1.bf16.msra.mxu1 %v2703_v44  ;;  %1194 = vmatprep.subr.bf16.mxu0 %v2748_v0  ;;  %v1832_v44 = vshrl.u32 %v3440_v61, 16  ;;  %v1770_v8 = vpack.c.bf16 %v1766_v37, %v1766_v37 }
  0x80   :  { %1451 = vmatprep.subr.bf16.mxu1 %v2748_v0  ;;  %v1331_v18 = vshrl.u32 %v3517_v7, 16  ;;  %v1334_v60 = vshll.u32 %v3517_v7, 16 }
  0x81   :  { %v1834_v32 = vrot.slane %v1832_v44, 1  ;;  %v1507_v44 = vld [vmem:[%s3910_s0 + $0x58] sm:$0xff] }
  0x82   :  { %1195 = vmatpush2.bf16.msra.mxu0 %v2704_v47  ;;  %v3467_v47 = vpack.c.bf16 %v1532_v58, %v745_v19  ;;  %v3483_v19 = vor.u32 %v1310_v62, %v1309_v28  ;;  %v1308_v58 = vsel %vm1280_vm3, %v3423_v24, %v3485_v55  ;;  %v2714_v62 = vld [vmem:[%s3909_s1 + $0x270] sm:$0xff]   ;;  %v1525_v56 = vmax.f32 %v1507_v44, 0.0 }
  0x83   :  { %1452 = vmatpush2.bf16.msra.mxu1 %v2705_v49  ;;  %1196 = vmatprep.subr.bf16.mxu0 %v2748_v0  ;;  %v1288_v49 = vor.u32 %v1287_v20, %v3417_v13  ;;  %v1864_v13 = vrot.slane %v1862_v39, 2  ;;  %v1871_v39 = vshll.u32 %v1770_v8, 16 }
  0x84   :  { %1453 = vmatprep.subr.bf16.mxu1 %v2748_v0  ;;  %v1850_v4 = vshrl.u32 %v3467_v47, 16  ;;  %v1853_v29 = vshll.u32 %v3467_v47, 16  ;;  %v1312_v20 = vsel %vm1280_vm3, %v3346_v42, %v3483_v19  ;;  %v1503_v42 = vld [vmem:[%s3910_s0 + $0x38] sm:$0xff] }
  0x85   :  { %v1292_v51 = vsel %vm1280_vm3, %v1288_v49, %v3423_v24  ;;  %v1505_v24 = vld [vmem:[%s3910_s0 + $0x48] sm:$0xff]  ;;  %v1877_v49 = vshrl.u32 %v1771_v59, 16  ;;  %v3579_v5 = vmax.f32 %v1503_v42, 0.0 }
  0x86   :  { %1197 = vmatpush2.bf16.msra.mxu0 %v2706_v23  ;;  %v1846_v23 = vrot.slane %v1844_v6, 2  ;;  %v1852_v16 = vrot.slane %v1850_v4, 1  ;;  %v1855_v35 = vrot.slane %v1853_v29, 2  ;;  %v1249_v6 = vmax.f32 %v1245_v11, 0.0  ;;  %v2717_v4 = vld [vmem:[%s3909_s1 + $0x2c8] sm:$0xff]  }
  0x87   :  { %1454 = vmatpush2.bf16.msra.mxu1 %v2707_v57  ;;  %1198 = vmatprep.subr.bf16.mxu0 %v2748_v0  ;;  %v2713_v57 = vld [vmem:[%s3909_s1 + $0x2d8] sm:$0xff]   ;;  %v1314_v29 = vrot.slane %v828_v36, 2  ;;  %v1028_v36 = vpack.c.bf16 %v1024_v21, %v1024_v21  ;;  %v1336_v11 = vrot.slane %v1334_v60, 2 }
  0x88   :  { %1455 = vmatprep.subr.bf16.mxu1 %v2748_v0  ;;  %v3523_v17 = vor.u32 %v1846_v23, %v1843_v46  ;;  %v3535_v28 = vor.u32 %v1855_v35, %v1852_v16  ;;  %v1880_v46 = vshll.u32 %v1771_v59, 16  ;;  %v1019_v23 = vld [vmem:[%s3910_s0 + $0x90] sm:$0x3]  ;;  %v1333_v35 = vrot.slane %v1331_v18, 1 }
  0x89   :  { %v1023_v7 = vmax.f32 %v1019_v23, 0.0  ;;  %v1080_v59 = vrot.slane %v1028_v36, 1  ;;  %v2727_v36 = vld [vmem:[%s3909_s1 + $0x2a0] sm:$0xff]  }
  0x8a   :  { %1199 = vmatpush2.bf16.msra.mxu0 %v2708_v3  ;;  %v1861_v3 = vrot.slane %v1859_v27, 1  ;;  %v1868_v27 = vshrl.u32 %v1770_v8, 16 }
  0x8b   :  { %1456 = vmatpush2.bf16.msra.mxu1 %v2709_v40  ;;  %1200 = vmatprep.subr.bf16.mxu0 %v2748_v0  ;;  %v3533_v40 = vor.u32 %v1837_v10, %v1834_v32  ;;  %v1879_v32 = vrot.slane %v1877_v49, 1  ;;  %v1882_v10 = vrot.slane %v1880_v46, 2  ;;  %v1081_v49 = vsel %vm533_vm2, %v1076_v33, %v1080_v59  ;;  %v2731_v59 = vld [vmem:[%s3909_s1 + $0x2f0] sm:$0xff]  }
  0x8c   :  { %1457 = vmatprep.subr.bf16.mxu1 %v2748_v0  ;;  %v3525_v22 = vor.u32 %v1864_v13, %v1861_v3  ;;  %v1870_v26 = vrot.slane %v1868_v27, 1  ;;  %v1873_v3 = vrot.slane %v1871_v39, 2  ;;  %v1077_v13 = vsel %vm533_vm2, %v1072_v12, %v1076_v33  ;;  %v1501_v12 = vld [vmem:[%s3910_s0 + $0x28] sm:$0xfc] }
  0x8d   :  { %v1883_v16 = vor.u32 %v1882_v10, %v1879_v32  ;;  %v1519_v21 = vmax.f32 %v1501_v12, 0.0  ;;  %v2724_v10 = vld [vmem:[%s3909_s1 + $0x248] sm:$0xff]   ;;  %v2728_v12 = vld [vmem:[%s3909_s1 + $0x298] sm:$0xff]  }
  0x8e   :  { %1201 = vmatpush2.bf16.msra.mxu0 %v2710_v2  ;;  %v3553_v2 = vsel %vm1280_vm3, %v3523_v17, %v3525_v22  ;;  %v1874_v38 = vor.u32 %v1873_v3, %v1870_v26  ;;  %v1506_v3 = vld [vmem:[%s3910_s0 + $0x50] sm:$0xff] }
  0x8f   :  { %1458 = vmatpush2.bf16.msra.mxu1 %v2711_v63  ;;  %1687 = vmatprep.subr.bf16.mxu0 %v2748_v0  ;;  %v3569_v63 = vsel %vm1280_vm3, %v3533_v40, %v3535_v28 }
  0x90   :  { %1973 = vmatprep.subr.bf16.mxu1 %v2748_v0 }
  0x91   :  { %1203 = vmatmul.mubr.bf16.vlgmr.msra.gmra.mxu0 %v1066_v30  ;;  %v1253_v30 = vpack.c.bf16 %v1249_v6, %v1249_v6 }
  0x92   :  { %1460 = vmatmul.mubr.bf16.vlgmr.msra.gmra.mxu1 %v1292_v51  ;;  %1688 = vmatpush1.bf16.msra.mxu0 %v2712_v43  ;;  %v1523_v43 = vmax.f32 %v1505_v24, 0.0  ;;  %v1320_v51 = vsel %vm1280_vm3, %v3483_v19, %v3540_v1  ;;  %v3619_v24 = vsel %vm1280_vm3, %v3535_v28, %v1874_v38  ;;  %v2720_v28 = vld [vmem:[%s3909_s1 + $0x258] sm:$0xff]   ;;  %v1524_v38 = vmax.f32 %v1506_v3, 0.0  ;;  %v2739_v3 = vld [vmem:[%s3909_s1 + $0x320] sm:$0xff]  }
  0x93   :  { %1974 = vmatpush1.bf16.msra.mxu1 %v2713_v57  ;;  %1689 = vmatprep.subr.bf16.mxu0 %v2748_v0  ;;  %v1765_v57 = vmax.f32 %v1761_v45, 0.0  ;;  %v1325_v42 = vshll.u32 %v1253_v30, 16 }
  0x94   :  { %1975 = vmatprep.subr.bf16.mxu1 %v2748_v0  ;;  %2452 = vmatprep.mubr.msk.bf16.mxu0 %vm262_vm0, %v1073_v54  ;;  %v2716_v54 = vld [vmem:[%s3909_s1 + $0x268] sm:$0xff]   ;;  %v3606_v37 = vpack.c.bf16 %v1525_v56, %v1523_v43  ;;  %v1537_v43 = vpack.c.bf16 %v3579_v5, %v1519_v21 }
  0x95   :  { %2492 = vmatprep.mubr.msk.bf16.mxu1 %vm262_vm0, %v1312_v20  ;;  %v1769_v19 = vpack.c.bf16 %v3579_v5, %v1765_v57  ;;  %v2719_v20 = vld [vmem:[%s3909_s1 + $0x2c0] sm:$0xff]   ;;  %v1327_v60 = vrot.slane %v1325_v42, 2  ;;  %v2730_v42 = vld [vmem:[%s3909_s1 + $0x290] sm:$0xff]  }
  0x96   :  { %1690 = vmatpush1.bf16.msra.mxu0 %v2714_v62  ;;  %v1322_v62 = vshrl.u32 %v1253_v30, 16  ;;  %v1823_v45 = vshrl.u32 %v3606_v37, 16  ;;  %v1826_v8 = vshll.u32 %v3606_v37, 16  ;;  %v1585_v57 = vrot.slane %v3606_v37, 1  ;;  %v2725_v30 = vld [vmem:[%s3909_s1 + $0x2a8] sm:$0xff]  }
  0x97   :  { %1976 = vmatpush1.bf16.msra.mxu1 %v2715_v53  ;;  %1691 = vmatprep.subr.bf16.mxu0 %v2748_v0  ;;  %v1337_v53 = vor.u32 %v1336_v11, %v1333_v35  ;;  %v1815_v6 = vshrl.u32 %v1769_v19, 16  ;;  %v1818_v44 = vshll.u32 %v1769_v19, 16  ;;  %v3696_v35 = vmax.f32 %v1502_v9, 0.0  ;;  %v2729_v19 = vld [vmem:[%s3909_s1 + $0x2f8] sm:$0xff]  }
  0x98   :  { %1977 = vmatprep.subr.bf16.mxu1 %v2748_v0  ;;  %v1324_v18 = vrot.slane %v1322_v62, 1  ;;  %v1828_v56 = vrot.slane %v1826_v8, 2 }
  0x99   :  { %1211 = vmatmul.mubr.bf16.gmra.mxu0 %v3507_v52  ;;  %v3611_v52 = vsel %vm1280_vm3, %v3525_v22, %v1883_v16  ;;  %v1075_v22 = vsel %vm533_vm2, %v1070_v34, %v1074_v25  ;;  %v1338_v23 = vsel %vm1280_vm3, %v3540_v1, %v1337_v53  ;;  %v1817_v27 = vrot.slane %v1815_v6, 1  ;;  %v2732_v6 = vld [vmem:[%s3909_s1 + $0x288] sm:$0xff]  }
  0x9a   :  { %1692 = vmatpush1.bf16.msra.mxu0 %v2716_v54  ;;  %1468 = vmatmul.mubr.bf16.gmra.mxu1 %v1308_v58  ;;  %v1315_v58 = vor.u32 %v1314_v29, %v1313_v15  ;;  %v1027_v15 = vpack.c.bf16 %v1023_v7, %v1023_v7  ;;  %v1820_v39 = vrot.slane %v1818_v44, 2  ;;  %v1825_v54 = vrot.slane %v1823_v45, 1  ;;  %v2726_v7 = vld [vmem:[%s3909_s1 + $0x240] sm:$0xff]   ;;  %v2733_v45 = vld [vmem:[%s3909_s1 + $0x2e8] sm:$0xff]  }
  0x9b   :  { %1978 = vmatpush1.bf16.msra.mxu1 %v2717_v4  ;;  %1693 = vmatprep.subr.bf16.mxu0 %v2748_v0  ;;  %v1328_v33 = vor.u32 %v1327_v60, %v1324_v18  ;;  %v1584_v1 = vrot.slane %v1537_v43, 1  ;;  %v2734_v60 = vld [vmem:[%s3909_s1 + $0x280] sm:$0xff]  }
  0x9c   :  { %1979 = vmatprep.subr.bf16.mxu1 %v2748_v0  ;;  %2453 = vmatprep.mubr.msk.bf16.mxu0 %vm262_vm0, %v1077_v13  ;;  %v1316_v34 = vsel %vm1280_vm3, %v3485_v55, %v1315_v58  ;;  %v1078_v46 = vrot.slane %v1027_v15, 1  ;;  %v2722_v55 = vld [vmem:[%s3909_s1 + $0x250] sm:$0xff]   ;;  %v1821_v4 = vor.u32 %v1820_v39, %v1817_v27  ;;  %v3664_v29 = vor.u32 %v1828_v56, %v1825_v54  ;;  %v1760_v13 = vld [vmem:[%s3910_s0 + $0x20] sm:$0xf8]  ;;  %v2736_v54 = vld [vmem:[%s3909_s1 + $0x338] sm:$0xff]  }
  0x9d   :  { %2493 = vmatprep.mubr.msk.bf16.mxu1 %vm262_vm0, %v1320_v51  ;;  %v1329_v26 = vsel %vm1280_vm3, %v1315_v58, %v1328_v33  ;;  %v1586_v51 = vsel %vm533_vm2, %v1584_v1, %v1585_v57  ;;  %v1589_v27 = vrot.slane %v3425_v48, 1  ;;  %v2737_v33 = vld [vmem:[%s3909_s1 + $0x330] sm:$0xff]   ;;  %v1587_v1 = vrot.slane %v3440_v61, 1 }
  0x9e   :  { %1694 = vmatpush1.bf16.msra.mxu0 %v2718_v41  ;;  %v1079_v32 = vsel %vm533_vm2, %v1074_v25, %v1078_v46  ;;  %v1504_v25 = vld [vmem:[%s3910_s0 + $0x40] sm:$0xff]  ;;  %v1830_v16 = vsel %vm1280_vm3, %v1821_v4, %v3664_v29  ;;  %v1764_v41 = vmax.f32 %v1760_v13, 0.0  ;;  %v1591_v13 = vrot.slane %v3467_v47, 1 }
  0x9f   :  { %1980 = vmatpush1.bf16.msra.mxu1 %v2719_v20  ;;  %1695 = vmatprep.subr.bf16.mxu0 %v2748_v0  ;;  %v1522_v11 = vmax.f32 %v1504_v25, 0.0  ;;  %v1500_v20 = vld [vmem:[%s3910_s0 + $0x20] sm:$0xfc] }
  0xa0   :  { %1981 = vmatprep.subr.bf16.mxu1 %v2748_v0  ;;  %v1768_v62 = vpack.c.bf16 %v3696_v35, %v1764_v41 }
  0xa1   :  { %1219 = vmatmul.mubr.bf16.gmra.mxu0 %v1075_v22  ;;  %v3711_v58 = vpack.c.bf16 %v1524_v38, %v1522_v11  ;;  %v1518_v22 = vmax.f32 %v1500_v20, 0.0  ;;  %v2740_v11 = vld [vmem:[%s3909_s1 + $0x318] sm:$0xff]  }
  0xa2   :  { %1696 = vmatpush1.bf16.msra.mxu0 %v2720_v28  ;;  %1476 = vmatmul.mubr.bf16.gmra.mxu1 %v1316_v34  ;;  %v1798_v15 = vshrl.u32 %v1768_v62, 16  ;;  %v1801_v53 = vshll.u32 %v1768_v62, 16  ;;  %v2742_v62 = vld [vmem:[%s3909_s1 + $0x308] sm:$0xff]  }
  0xa3   :  { %1982 = vmatpush1.bf16.msra.mxu1 %v2721_v31  ;;  %1697 = vmatprep.subr.bf16.mxu0 %v2748_v0  ;;  %v1806_v21 = vshrl.u32 %v3711_v58, 16  ;;  %v1809_v28 = vshll.u32 %v3711_v58, 16  ;;  %v1536_v44 = vpack.c.bf16 %v3696_v35, %v1518_v22  ;;  %v1582_v46 = vrot.slane %v3711_v58, 1 }
  0xa4   :  { %1983 = vmatprep.subr.bf16.mxu1 %v2748_v0  ;;  %2454 = vmatprep.mubr.msk.bf16.mxu0 %vm262_vm0, %v1081_v49  ;;  %v1800_v8 = vrot.slane %v1798_v15, 1  ;;  %v1803_v31 = vrot.slane %v1801_v53, 2  ;;  %v2100_v22 = vrot.slane %v3452_v14, 2  ;;  %v2745_v15 = vld [vmem:[%s3909_s1 + $0x350] sm:$0xff]  }
  0xa5   :  { %2494 = vmatprep.mubr.msk.bf16.mxu1 %vm262_vm0, %v1338_v23  ;;  %v1808_v34 = vrot.slane %v1806_v21, 1  ;;  %v1811_v18 = vrot.slane %v1809_v28, 2  ;;  %v1581_v49 = vrot.slane %v1536_v44, 1  ;;  %v2735_v23 = vld [vmem:[%s3909_s1 + $0x2e0] sm:$0xff]   ;;  %v2746_v28 = vld [vmem:[%s3909_s1 + $0x348] sm:$0xff]  }
  0xa6   :  { %1698 = vmatpush1.bf16.msra.mxu0 %v2722_v55  ;;  %v1804_v43 = vor.u32 %v1803_v31, %v1800_v8  ;;  %v2747_v8 = vld [vmem:[%s3909_s1 + $0x340] sm:$0xff]  }
  0xa7   :  { %1984 = vmatpush1.bf16.msra.mxu1 %v2723_v50  ;;  %1699 = vmatprep.subr.bf16.mxu0 %v2748_v0  ;;  %v1812_v55 = vor.u32 %v1811_v18, %v1808_v34  ;;  %v1583_v39 = vsel %vm533_vm2, %v1581_v49, %v1582_v46  ;;  %v1590_v50 = vsel %vm533_vm2, %v1585_v57, %v1589_v27  ;;  %v1593_v57 = vrot.slane %v3452_v14, 1  ;;  %v2046_v14 = vld [vmem:[%s3910_s0 + $0x20] sm:$0xf0] }
  0xa8   :  { %1985 = vmatprep.subr.bf16.mxu1 %v2748_v0  ;;  %v2050_v53 = vmax.f32 %v2046_v14, 0.0  ;;  %v2089_v34 = vrot.slane %v3711_v58, 2  ;;  %v2098_v18 = vrot.slane %v3467_v47, 2 }
  0xa9   :  { %1227 = vmatmul.mubr.bf16.gmra.mxu0 %v1079_v32  ;;  %v1813_v56 = vsel %vm1280_vm3, %v1804_v43, %v1812_v55  ;;  %v1848_v32 = vsel %vm1280_vm3, %v3664_v29, %v3523_v17  ;;  %v2738_v17 = vld [vmem:[%s3909_s1 + $0x328] sm:$0xff]   ;;  %v1839_v29 = vsel %vm1280_vm3, %v1812_v55, %v3533_v40  ;;  %v1594_v9 = vsel %vm533_vm2, %v1589_v27, %v1593_v57 }
  0xaa   :  { %1700 = vmatpush1.bf16.msra.mxu0 %v2724_v10  ;;  %1484 = vmatmul.mubr.bf16.gmra.mxu1 %v1329_v26  ;;  %v1517_v10 = vld [vmem:[%s3910_s0 + $0xa8] sm:$0x3]  ;;  %v1516_v26 = vld [vmem:[%s3910_s0 + $0xa0] sm:$0x3]  ;;  %v2047_v40 = vld [vmem:[%s3910_s0 + $0x28] sm:$0xf0] }
  0xab   :  { %1986 = vmatpush1.bf16.msra.mxu1 %v2725_v30  ;;  %1701 = vmatprep.subr.bf16.mxu0 %v2748_v0  ;;  %v1535_v4 = vmax.f32 %v1517_v10, 0.0  ;;  %v1588_v30 = vsel %vm533_vm2, %v1582_v46, %v1587_v1 }
  0xac   :  { %1987 = vmatprep.subr.bf16.mxu1 %v2748_v0  ;;  %2531 = vmatprep.mubr.msk.bf16.mxu0 %vm262_vm0, %v1586_v51  ;;  %v1534_v51 = vmax.f32 %v1516_v26, 0.0 }
  0xad   :  { %2571 = vmatprep.mubr.msk.bf16.mxu1 %vm262_vm0, %v1830_v16  ;;  %v1545_v25 = vpack.c.bf16 %v1535_v4, %v1535_v4  ;;  %v2051_v16 = vmax.f32 %v2047_v40, 0.0 }
  0xae   :  { %1702 = vmatpush1.bf16.msra.mxu0 %v2726_v7  ;;  %v1544_v38 = vpack.c.bf16 %v1534_v51, %v1534_v51 }
  0xaf   :  { %1988 = vmatpush1.bf16.msra.mxu1 %v2727_v36  ;;  %1711 = vmatprep.subr.bf16.mxu0 %v2748_v0  ;;  %v1597_v7 = vrot.slane %v1545_v25, 1  ;;  %v1592_v36 = vsel %vm533_vm2, %v1587_v1, %v1591_v13 }
  0xb0   :  { %1997 = vmatprep.subr.bf16.mxu1 %v2748_v0 }
  0xb1   :  { %v1598_v41 = vsel %vm533_vm2, %v1593_v57, %v1597_v7 }
  0xb2   :  { %1712 = vmatpush2.bf16.msra.mxu0 %v2728_v12  ;;  %v2741_v12 = vld [vmem:[%s3909_s1 + $0x310] sm:$0xff]  }
  0xb3   :  { %1998 = vmatpush2.bf16.msra.mxu1 %v2729_v19  ;;  %1713 = vmatprep.subr.bf16.mxu0 %v2748_v0  ;;  %v1595_v19 = vrot.slane %v1544_v38, 1 }
  0xb4   :  { %1999 = vmatprep.subr.bf16.mxu1 %v2748_v0 }
  0xb6   :  { %1714 = vmatpush2.bf16.msra.mxu0 %v2730_v42  ;;  %v2096_v42 = vrot.slane %v3425_v48, 2  ;;  %v2744_v48 = vld [vmem:[%s3909_s1 + $0x358] sm:$0xff]  }
  0xb7   :  { %2000 = vmatpush2.bf16.msra.mxu1 %v2731_v59  ;;  %1715 = vmatprep.subr.bf16.mxu0 %v2748_v0 }
  0xb8   :  { %2001 = vmatprep.subr.bf16.mxu1 %v2748_v0  ;;  %v2101_v59 = vsel %vm2087_vm4, %v2096_v42, %v2100_v22 }
  0xba   :  { %1716 = vmatpush2.bf16.msra.mxu0 %v2732_v6  ;;  %v2054_v6 = vpack.c.bf16 %v3696_v35, %v2050_v53  ;;  %v2094_v35 = vrot.slane %v3440_v61, 2 }
  0xbb   :  { %2002 = vmatpush2.bf16.msra.mxu1 %v2733_v45  ;;  %1717 = vmatprep.subr.bf16.mxu0 %v2748_v0  ;;  %v2048_v45 = vld [vmem:[%s3910_s0 + $0xa0] sm:$0xf] }
  0xbc   :  { %2003 = vmatprep.subr.bf16.mxu1 %v2748_v0  ;;  %v2088_v31 = vrot.slane %v2054_v6, 2 }
  0xbe   :  { %1718 = vmatpush2.bf16.msra.mxu0 %v2734_v60  ;;  %v2052_v60 = vmax.f32 %v2048_v45, 0.0  ;;  %v2090_v46 = vsel %vm2087_vm4, %v2088_v31, %v2089_v34 }
  0xbf   :  { %2004 = vmatpush2.bf16.msra.mxu1 %v2735_v23  ;;  %2194 = vmatprep.subr.bf16.mxu0 %v2748_v0  ;;  %v2099_v23 = vsel %vm2087_vm4, %v2094_v35, %v2098_v18 }
  0xc0   :  { %2615 = vmatprep.subr.bf16.mxu1 %v2748_v0  ;;  %v2056_v58 = vpack.c.bf16 %v2052_v60, %v2052_v60 }
  0xc1   :  { %1720 = vmatmul.mubr.bf16.vlgmr.msra.gmra.mxu0 %v1583_v39 }
  0xc2   :  { %2006 = vmatmul.mubr.bf16.vlgmr.msra.gmra.mxu1 %v1813_v56  ;;  %2195 = vmatpush1.bf16.msra.mxu0 %v2736_v54  ;;  %v2102_v39 = vrot.slane %v2056_v58, 2 }
  0xc3   :  { %2627 = vmatpush1.bf16.msra.mxu1 %v2736_v54  ;;  %2196 = vmatprep.subr.bf16.mxu0 %v2748_v0 }
  0xc4   :  { %2616 = vmatprep.subr.bf16.mxu1 %v2748_v0  ;;  %2532 = vmatprep.mubr.msk.bf16.mxu0 %vm262_vm0, %v1590_v50  ;;  %v2103_v10 = vsel %vm2087_vm4, %v2098_v18, %v2102_v39 }
  0xc5   :  { %2572 = vmatprep.mubr.msk.bf16.mxu1 %vm262_vm0, %v1848_v32 }
  0xc6   :  { %2197 = vmatpush1.bf16.msra.mxu0 %v2737_v33 }
  0xc7   :  { %2628 = vmatpush1.bf16.msra.mxu1 %v2737_v33  ;;  %2198 = vmatprep.subr.bf16.mxu0 %v2748_v0  ;;  %v2095_v33 = vsel %vm2087_vm4, %v2089_v34, %v2094_v35 }
  0xc8   :  { %2617 = vmatprep.subr.bf16.mxu1 %v2748_v0 }
  0xc9   :  { %1728 = vmatmul.mubr.bf16.gmra.mxu0 %v1588_v30 }
  0xca   :  { %2199 = vmatpush1.bf16.msra.mxu0 %v2738_v17  ;;  %2014 = vmatmul.mubr.bf16.gmra.mxu1 %v1839_v29 }
  0xcb   :  { %2629 = vmatpush1.bf16.msra.mxu1 %v2738_v17  ;;  %2200 = vmatprep.subr.bf16.mxu0 %v2748_v0 }
  0xcc   :  { %2618 = vmatprep.subr.bf16.mxu1 %v2748_v0  ;;  %2533 = vmatprep.mubr.msk.bf16.mxu0 %vm262_vm0, %v1594_v9 }
  0xcd   :  { %2573 = vmatprep.mubr.msk.bf16.mxu1 %vm262_vm0, %v3553_v2  ;;  %v2055_v2 = vpack.c.bf16 %v3579_v5, %v2051_v16  ;;  %v2092_v5 = vrot.slane %v3606_v37, 2 }
  0xce   :  { %2201 = vmatpush1.bf16.msra.mxu0 %v2739_v3 }
  0xcf   :  { %2630 = vmatpush1.bf16.msra.mxu1 %v2739_v3  ;;  %2202 = vmatprep.subr.bf16.mxu0 %v2748_v0  ;;  %v2091_v20 = vrot.slane %v2055_v2, 2  ;;  %v2097_v43 = vsel %vm2087_vm4, %v2092_v5, %v2096_v42 }
  0xd0   :  { %2619 = vmatprep.subr.bf16.mxu1 %v2748_v0 }
  0xd1   :  { %1736 = vmatmul.mubr.bf16.gmra.mxu0 %v1592_v36  ;;  %v2093_v37 = vsel %vm2087_vm4, %v2091_v20, %v2092_v5 }
  0xd2   :  { %2203 = vmatpush1.bf16.msra.mxu0 %v2740_v11  ;;  %2022 = vmatmul.mubr.bf16.gmra.mxu1 %v3569_v63  ;;  %v1596_v63 = vsel %vm533_vm2, %v1591_v13, %v1595_v19 }
  0xd3   :  { %2631 = vmatpush1.bf16.msra.mxu1 %v2740_v11  ;;  %2204 = vmatprep.subr.bf16.mxu0 %v2748_v0 }
  0xd4   :  { %2620 = vmatprep.subr.bf16.mxu1 %v2748_v0  ;;  %2534 = vmatprep.mubr.msk.bf16.mxu0 %vm262_vm0, %v1598_v41 }
  0xd5   :  { %2574 = vmatprep.mubr.msk.bf16.mxu1 %vm262_vm0, %v3611_v52  ;;  %v2743_v52 = vld [vmem:[%s3909_s1 + $0x300] sm:$0xff]  }
  0xd6   :  { %2205 = vmatpush1.bf16.msra.mxu0 %v2741_v12 }
  0xd7   :  { %2632 = vmatpush1.bf16.msra.mxu1 %v2741_v12  ;;  %2206 = vmatprep.subr.bf16.mxu0 %v2748_v0 }
  0xd8   :  { %2621 = vmatprep.subr.bf16.mxu1 %v2748_v0 }
  0xd9   :  { %1744 = vmatmul.mubr.bf16.gmra.mxu0 %v1596_v63 }
  0xda   :  { %2207 = vmatpush1.bf16.msra.mxu0 %v2742_v62  ;;  %2030 = vmatmul.mubr.bf16.gmra.mxu1 %v3619_v24  ;;  %v2049_v24 = vld [vmem:[%s3910_s0 + $0xa8] sm:$0xf] }
  0xdb   :  { %2633 = vmatpush1.bf16.msra.mxu1 %v2742_v62  ;;  %2208 = vmatprep.subr.bf16.mxu0 %v2748_v0  ;;  %v2053_v21 = vmax.f32 %v2049_v24, 0.0 }
  0xdc   :  { %2622 = vmatprep.subr.bf16.mxu1 %v2748_v0  ;;  %2611 = vmatprep.mubr.msk.bf16.mxu0 %vm262_vm0, %v2093_v37 }
  0xdd   :  { %2613 = vmatprep.mubr.msk.bf16.mxu1 %vm262_vm0, %v2101_v59  ;;  %v2057_v44 = vpack.c.bf16 %v2053_v21, %v2053_v21 }
  0xde   :  { %2209 = vmatpush1.bf16.msra.mxu0 %v2743_v52 }
  0xdf   :  { %2634 = vmatpush1.bf16.msra.mxu1 %v2743_v52  ;;  %2218 = vmatprep.subr.bf16.mxu0 %v2748_v0  ;;  %v2104_v49 = vrot.slane %v2057_v44, 2 }
  0xe0   :  { %2623 = vmatprep.subr.bf16.mxu1 %v2748_v0 }
  0xe1   :  { %v2105_v55 = vsel %vm2087_vm4, %v2100_v22, %v2104_v49 }
  0xe2   :  { %2219 = vmatpush2.bf16.msra.mxu0 %v2744_v48 }
  0xe3   :  { %2635 = vmatpush2.bf16.msra.mxu1 %v2744_v48  ;;  %2220 = vmatprep.subr.bf16.mxu0 %v2748_v0 }
  0xe4   :  { %2624 = vmatprep.subr.bf16.mxu1 %v2748_v0 }
  0xe6   :  { %2221 = vmatpush2.bf16.msra.mxu0 %v2745_v15 }
  0xe7   :  { %2636 = vmatpush2.bf16.msra.mxu1 %v2745_v15  ;;  %2222 = vmatprep.subr.bf16.mxu0 %v2748_v0 }
  0xe8   :  { %2625 = vmatprep.subr.bf16.mxu1 %v2748_v0 }
  0xea   :  { %2223 = vmatpush2.bf16.msra.mxu0 %v2746_v28 }
  0xeb   :  { %2637 = vmatpush2.bf16.msra.mxu1 %v2746_v28  ;;  %2224 = vmatprep.subr.bf16.mxu0 %v2748_v0 }
  0xec   :  { %2626 = vmatprep.subr.bf16.mxu1 %v2748_v0 }
  0xee   :  { %2225 = vmatpush2.bf16.msra.mxu0 %v2747_v8 }
  0xef   :  { %2638 = vmatpush2.bf16.msra.mxu1 %v2747_v8 }
  0xf1   :  { %v309_v27 = vpop.f32.mrf.mxu0  ;;  %2227 = vmatmul.mubr.bf16.vlgmr.msra.gmra.mxu0 %v2090_v46 }
  0xf2   :  { %v455_v61 = vpop.f32.mrf.mxu1  ;;  %2243 = vmatmul.mubr.bf16.vlgmr.msra.gmra.mxu1 %v2099_v23  ;;  %2612 = vmatprep.mubr.msk.bf16.mxu0 %vm262_vm0, %v2097_v43 }
  0xf3   :  { %v456_v47 = vadd.f32 %v455_v61, %v309_v27  ;;  %v311_v0 = vpop.f32.mrf.mxu0  ;;  %2614 = vmatprep.mubr.msk.bf16.mxu1 %vm262_vm0, %v2105_v55 }
  0xf4   :  { %v457_v54 = vpop.f32.mrf.mxu1 }
  0xf5   :  { %v312_v56 = vpop.f32.mrf.mxu0 }
  0xf6   :  { %v458_v50 = vpop.f32.mrf.mxu1 }
  0xf7   :  { %v459_v1 = vadd.f32 %v458_v50, %v312_v56  ;;  %v314_v32 = vpop.f32.mrf.mxu0 }
  0xf8   :  { %v460_v57 = vpop.f32.mrf.mxu1 }
  0xf9   :  { %2235 = vmatmul.mubr.bf16.gmra.mxu0 %v2095_v33  ;;  %v317_v4 = vpop.f32.mrf.mxu0 }
  0xfa   :  { %2251 = vmatmul.mubr.bf16.gmra.mxu1 %v2103_v10  ;;  %v463_v30 = vpop.f32.mrf.mxu1 }
  0xfb   :  { %v464_v17 = vadd.f32 %v463_v30, %v317_v4  ;;  %v319_v29 = vpop.f32.mrf.mxu0 }
  0xfc   :  { %v465_v26 = vpop.f32.mrf.mxu1 }
  0xfd   :  { %v320_v9 = vpop.f32.mrf.mxu0 }
  0xfe   :  { %v466_v25 = vpop.f32.mrf.mxu1 }
  0xff   :  { %v467_v3 = vadd.f32 %v466_v25, %v320_v9  ;;  %v322_v13 = vpop.f32.mrf.mxu0 }
 0x100   :  { %v468_v51 = vpop.f32.mrf.mxu1 }
 0x101   :  { %v325_v40 = vpop.f32.mrf.mxu0 }
 0x102   :  { %v471_v7 = vpop.f32.mrf.mxu1 }
 0x103   :  { %v472_v16 = vadd.f32 %v471_v7, %v325_v40  ;;  %v327_v36 = vpop.f32.mrf.mxu0 }
 0x104   :  { %v473_v11 = vpop.f32.mrf.mxu1 }
 0x105   :  { %v328_v38 = vpop.f32.mrf.mxu0 }
 0x106   :  { %v474_v41 = vpop.f32.mrf.mxu1 }
 0x107   :  { %v475_v2 = vadd.f32 %v474_v41, %v328_v38  ;;  %v330_v12 = vpop.f32.mrf.mxu0 }
 0x108   :  { %v476_v19 = vpop.f32.mrf.mxu1 }
 0x109   :  { %v333_v20 = vpop.f32.mrf.mxu0 }
 0x10a   :  { %v479_v5 = vpop.f32.mrf.mxu1 }
 0x10b   :  { %v480_v63 = vadd.f32 %v479_v5, %v333_v20  ;;  %v335_v62 = vpop.f32.mrf.mxu0 }
 0x10c   :  { %v481_v42 = vpop.f32.mrf.mxu1 }
 0x10d   :  { %v336_v22 = vpop.f32.mrf.mxu0 }
 0x10e   :  { %v482_v37 = vpop.f32.mrf.mxu1 }
 0x10f   :  { %v483_v52 = vadd.f32 %v482_v37, %v336_v22  ;;  %v338_v59 = vpop.f32.mrf.mxu0 }
 0x110   :  { %v484_v48 = vpop.f32.mrf.mxu1 }
 0x121   :  { %v674_v14 = vpop.f32.mrf.mxu0 }
 0x122   :  { %v705_v24 = vadd.f32 %v674_v14, %v456_v47  ;;  %v978_v15 = vpop.f32.mrf.mxu1 }
 0x123   :  { %v676_v53 = vpop.f32.mrf.mxu0 }
 0x124   :  { %v1009_v21 = vadd.f32 %v978_v15, %v705_v24  ;;  %v980_v28 = vpop.f32.mrf.mxu1 }
 0x125   :  { %v677_v6 = vpop.f32.mrf.mxu0 }
 0x126   :  { %v706_v44 = vadd.f32 %v677_v6, %v459_v1  ;;  %v981_v45 = vpop.f32.mrf.mxu1 }
 0x127   :  { %v679_v8 = vpop.f32.mrf.mxu0 }
 0x128   :  { %v1010_v31 = vadd.f32 %v981_v45, %v706_v44  ;;  %v983_v34 = vpop.f32.mrf.mxu1 }
 0x129   :  { %v682_v35 = vpop.f32.mrf.mxu0 }
 0x12a   :  { %v707_v18 = vadd.f32 %v682_v35, %v464_v17  ;;  %v986_v60 = vpop.f32.mrf.mxu1 }
 0x12b   :  { %v684_v49 = vpop.f32.mrf.mxu0 }
 0x12c   :  { %v1011_v46 = vadd.f32 %v986_v60, %v707_v18  ;;  %v988_v23 = vpop.f32.mrf.mxu1 }
 0x12d   :  { %v685_v43 = vpop.f32.mrf.mxu0 }
 0x12e   :  { %v708_v58 = vadd.f32 %v685_v43, %v467_v3  ;;  %v989_v55 = vpop.f32.mrf.mxu1 }
 0x12f   :  { %v687_v27 = vpop.f32.mrf.mxu0 }
 0x130   :  { %v1012_v61 = vadd.f32 %v989_v55, %v708_v58  ;;  %v991_v47 = vpop.f32.mrf.mxu1 }
 0x131   :  { %v690_v0 = vpop.f32.mrf.mxu0 }
 0x132   :  { %v709_v39 = vadd.f32 %v690_v0, %v472_v16  ;;  %v994_v54 = vpop.f32.mrf.mxu1 }
 0x133   :  { %v692_v56 = vpop.f32.mrf.mxu0 }
 0x134   :  { %v1013_v50 = vadd.f32 %v994_v54, %v709_v39  ;;  %v996_v33 = vpop.f32.mrf.mxu1 }
 0x135   :  { %v693_v1 = vpop.f32.mrf.mxu0 }
 0x136   :  { %v710_v32 = vadd.f32 %v693_v1, %v475_v2  ;;  %v997_v10 = vpop.f32.mrf.mxu1 }
 0x137   :  { %v695_v57 = vpop.f32.mrf.mxu0 }
 0x138   :  { %v1014_v4 = vadd.f32 %v997_v10, %v710_v32  ;;  %v999_v30 = vpop.f32.mrf.mxu1 }
 0x139   :  { %v698_v17 = vpop.f32.mrf.mxu0 }
 0x13a   :  { %v711_v29 = vadd.f32 %v698_v17, %v480_v63  ;;  %v1002_v26 = vpop.f32.mrf.mxu1 }
 0x13b   :  { %v700_v9 = vpop.f32.mrf.mxu0 }
 0x13c   :  { %v1015_v25 = vadd.f32 %v1002_v26, %v711_v29  ;;  %v1004_v3 = vpop.f32.mrf.mxu1 }
 0x13d   :  { %v701_v13 = vpop.f32.mrf.mxu0 }
 0x13e   :  { %v712_v51 = vadd.f32 %v701_v13, %v483_v52  ;;  %v1005_v40 = vpop.f32.mrf.mxu1 }
 0x13f   :  { %v703_v7 = vpop.f32.mrf.mxu0 }
 0x140   :  { %v1016_v16 = vadd.f32 %v1005_v40, %v712_v51  ;;  %v1007_v36 = vpop.f32.mrf.mxu1 }
 0x151   :  { %v1204_v11 = vpop.f32.mrf.mxu0 }
 0x152   :  { %v1235_v38 = vadd.f32 %v1204_v11, %v1009_v21  ;;  %v1461_v41 = vpop.f32.mrf.mxu1 }
 0x153   :  { %v1206_v2 = vpop.f32.mrf.mxu0 }
 0x154   :  { %v3870_v12 = vadd.f32 %v1461_v41, %v1235_v38  ;;  %v1463_v19 = vpop.f32.mrf.mxu1 }
 0x155   :  { %v1207_v20 = vpop.f32.mrf.mxu0 }
 0x156   :  { %v1236_v5 = vadd.f32 %v1207_v20, %v1010_v31  ;;  %v1464_v63 = vpop.f32.mrf.mxu1 }
 0x157   :  { %v1209_v62 = vpop.f32.mrf.mxu0 }
 0x158   :  { %v3872_v42 = vadd.f32 %v1464_v63, %v1236_v5  ;;  %v1466_v22 = vpop.f32.mrf.mxu1 }
 0x159   :  { %v1212_v37 = vpop.f32.mrf.mxu0 }
 0x15a   :  { %v1237_v52 = vadd.f32 %v1212_v37, %v1011_v46  ;;  %v1469_v59 = vpop.f32.mrf.mxu1 }
 0x15b   :  { %v1214_v48 = vpop.f32.mrf.mxu0 }
 0x15c   :  { %v3874_v14 = vadd.f32 %v1469_v59, %v1237_v52  ;;  %v1471_v24 = vpop.f32.mrf.mxu1 }
 0x15d   :  { %v1215_v15 = vpop.f32.mrf.mxu0 }
 0x15e   :  { %v1238_v53 = vadd.f32 %v1215_v15, %v1012_v61  ;;  %v1472_v21 = vpop.f32.mrf.mxu1 }
 0x15f   :  { %v1217_v28 = vpop.f32.mrf.mxu0 }
 0x160   :  { %v3876_v6 = vadd.f32 %v1472_v21, %v1238_v53  ;;  %v1474_v44 = vpop.f32.mrf.mxu1 }
 0x161   :  { %v1220_v45 = vpop.f32.mrf.mxu0 }
 0x162   :  { %v1239_v8 = vadd.f32 %v1220_v45, %v1013_v50  ;;  %v1477_v31 = vpop.f32.mrf.mxu1 }
 0x163   :  { %v1222_v34 = vpop.f32.mrf.mxu0 }
 0x164   :  { %v1496_v35 = vadd.f32 %v1477_v31, %v1239_v8  ;;  %v1479_v18 = vpop.f32.mrf.mxu1 }
 0x165   :  { %v1223_v60 = vpop.f32.mrf.mxu0 }
 0x166   :  { %v1240_v49 = vadd.f32 %v1223_v60, %v1014_v4  ;;  %v1480_v46 = vpop.f32.mrf.mxu1 }
 0x167   :  { %v1225_v23 = vpop.f32.mrf.mxu0 }
 0x168   :  { %v1497_v43 = vadd.f32 %v1480_v46, %v1240_v49  ;;  %v1482_v58 = vpop.f32.mrf.mxu1 }
 0x169   :  { %v1228_v55 = vpop.f32.mrf.mxu0 }
 0x16a   :  { %v1241_v27 = vadd.f32 %v1228_v55, %v1015_v25  ;;  %v1485_v61 = vpop.f32.mrf.mxu1 }
 0x16b   :  { %v1230_v47 = vpop.f32.mrf.mxu0 }
 0x16c   :  { %v1498_v0 = vadd.f32 %v1485_v61, %v1241_v27  ;;  %v1487_v39 = vpop.f32.mrf.mxu1 }
 0x16d   :  { %v1231_v54 = vpop.f32.mrf.mxu0 }
 0x16e   :  { %v1242_v56 = vadd.f32 %v1231_v54, %v1016_v16  ;;  %v1488_v33 = vpop.f32.mrf.mxu1 }
 0x16f   :  { %v1233_v50 = vpop.f32.mrf.mxu0 }
 0x170   :  { %v3878_v1 = vadd.f32 %v1488_v33, %v1242_v56  ;;  %v1490_v32 = vpop.f32.mrf.mxu1 }
 0x181   :  { %v1721_v10 = vpop.f32.mrf.mxu0 }
 0x182   :  { %v2007_v57 = vpop.f32.mrf.mxu1  ;;  %v1752_v53 = vadd.f32 %v1721_v10, %v3870_v12 }
 0x183   :  { %v1723_v4 = vpop.f32.mrf.mxu0 }
 0x184   :  { %v2009_v30 = vpop.f32.mrf.mxu1  ;;  %v2038_v28 = vadd.f32 %v2007_v57, %v1752_v53 }
 0x185   :  { %v1724_v17 = vpop.f32.mrf.mxu0 }
 0x186   :  { %v2010_v29 = vpop.f32.mrf.mxu1  ;;  %v1753_v44 = vadd.f32 %v1724_v17, %v3872_v42 }
 0x187   :  { %v1726_v26 = vpop.f32.mrf.mxu0 }
 0x188   :  { %v2012_v9 = vpop.f32.mrf.mxu1  ;;  %v2039_v46 = vadd.f32 %v2010_v29, %v1753_v44 }
 0x189   :  { %v1729_v25 = vpop.f32.mrf.mxu0 }
 0x18a   :  { %v2015_v3 = vpop.f32.mrf.mxu1  ;;  %v1754_v23 = vadd.f32 %v1729_v25, %v3874_v14 }
 0x18b   :  { %v1731_v13 = vpop.f32.mrf.mxu0 }
 0x18c   :  { %v2017_v51 = vpop.f32.mrf.mxu1  ;;  %v2040_v47 = vadd.f32 %v2015_v3, %v1754_v23 }
 0x18d   :  { %v1732_v40 = vpop.f32.mrf.mxu0 }
 0x18e   :  { %v2018_v7 = vpop.f32.mrf.mxu1  ;;  %v1755_v39 = vadd.f32 %v1732_v40, %v3876_v6 }
 0x18f   :  { %v1734_v16 = vpop.f32.mrf.mxu0 }
 0x190   :  { %v2020_v36 = vpop.f32.mrf.mxu1  ;;  %v2041_v57 = vadd.f32 %v2018_v7, %v1755_v39 }
 0x191   :  { %v1737_v11 = vpop.f32.mrf.mxu0 }
 0x192   :  { %v2023_v38 = vpop.f32.mrf.mxu1  ;;  %v1756_v21 = vadd.f32 %v1737_v11, %v1496_v35 }
 0x193   :  { %v1739_v41 = vpop.f32.mrf.mxu0 }
 0x194   :  { %v2025_v2 = vpop.f32.mrf.mxu1  ;;  %v2042_v45 = vadd.f32 %v2023_v38, %v1756_v21 }
 0x195   :  { %v1740_v19 = vpop.f32.mrf.mxu0 }
 0x196   :  { %v2026_v20 = vpop.f32.mrf.mxu1  ;;  %v1757_v8 = vadd.f32 %v1740_v19, %v1497_v43 }
 0x197   :  { %v1742_v5 = vpop.f32.mrf.mxu0 }
 0x198   :  { %v2028_v63 = vpop.f32.mrf.mxu1  ;;  %v2043_v12 = vadd.f32 %v2026_v20, %v1757_v8 }
 0x199   :  { %v1745_v62 = vpop.f32.mrf.mxu0 }
 0x19a   :  { %v2031_v22 = vpop.f32.mrf.mxu1  ;;  %v1758_v35 = vadd.f32 %v1745_v62, %v1498_v0 }
 0x19b   :  { %v1747_v37 = vpop.f32.mrf.mxu0 }
 0x19c   :  { %v2033_v52 = vpop.f32.mrf.mxu1  ;;  %v2044_v54 = vadd.f32 %v2031_v22, %v1758_v35 }
 0x19d   :  { %v1748_v59 = vpop.f32.mrf.mxu0 }
 0x19e   :  { %v2034_v48 = vpop.f32.mrf.mxu1  ;;  %v1759_v0 = vadd.f32 %v1748_v59, %v3878_v1 }
 0x19f   :  { %v1750_v24 = vpop.f32.mrf.mxu0 }
 0x1a0   :  { %v2036_v15 = vpop.f32.mrf.mxu1  ;;  %v2045_v4 = vadd.f32 %v2034_v48, %v1759_v0 }
 0x1b1   :  { %v2228_v31 = vpop.f32.mrf.mxu0 }
 0x1b2   :  { %v2259_v34 = vadd.f32 %v2228_v31, %v2038_v28  ;;  %v2244_v18 = vpop.f32.mrf.mxu1 }
 0x1b3   :  { %v2263_v60 = vadd.f32 %v2244_v18, %v2042_v45  ;;  %v2230_v49 = vpop.f32.mrf.mxu0 }
 0x1b4   :  { %2267 = vst [vmem:[%s3911_s2] sm:$0xff] %v2259_v34  ;;  %v2246_v58 = vpop.f32.mrf.mxu1 }
 0x1b5   :  { %2271 = vst [vmem:[%s3911_s2 + $0x20] sm:$0xff] %v2263_v60  ;;  %v2231_v42 = vpop.f32.mrf.mxu0 }
 0x1b6   :  { %v2260_v43 = vadd.f32 %v2231_v42, %v2039_v46  ;;  %v2247_v55 = vpop.f32.mrf.mxu1 }
 0x1b7   :  { %v2264_v27 = vadd.f32 %v2247_v55, %v2043_v12  ;;  %v2233_v61 = vpop.f32.mrf.mxu0 }
 0x1b8   :  { %2268 = vst [vmem:[%s3911_s2 + $0x8] sm:$0xff] %v2260_v43  ;;  %v2249_v14 = vpop.f32.mrf.mxu1 }
 0x1b9   :  { %2272 = vst [vmem:[%s3911_s2 + $0x28] sm:$0xff] %v2264_v27  ;;  %v2236_v56 = vpop.f32.mrf.mxu0 }
 0x1ba   :  { %v2261_v33 = vadd.f32 %v2236_v56, %v2040_v47  ;;  %v2252_v50 = vpop.f32.mrf.mxu1 }
 0x1bb   :  { %v2265_v32 = vadd.f32 %v2252_v50, %v2044_v54  ;;  %v2238_v10 = vpop.f32.mrf.mxu0 }
 0x1bc   :  { %2269 = vst [vmem:[%s3911_s2 + $0x10] sm:$0xff] %v2261_v33  ;;  %v2254_v6 = vpop.f32.mrf.mxu1 }
 0x1bd   :  { %2273 = vst [vmem:[%s3911_s2 + $0x30] sm:$0xff] %v2265_v32  ;;  %v2239_v1 = vpop.f32.mrf.mxu0 }
 0x1be   :  { %v2262_v30 = vadd.f32 %v2239_v1, %v2041_v57  ;;  %v2255_v17 = vpop.f32.mrf.mxu1 }
 0x1bf   :  { %v2266_v29 = vadd.f32 %v2255_v17, %v2045_v4  ;;  %v2241_v26 = vpop.f32.mrf.mxu0 }
 0x1c0   :  { %2270 = vst [vmem:[%s3911_s2 + $0x18] sm:$0xff] %v2262_v30  ;;  %v2257_v9 = vpop.f32.mrf.mxu1 }
 0x1c1   :  { %2274 = vst [vmem:[%s3911_s2 + $0x38] sm:$0xff] %v2266_v29 }

</bundles_post_ra>
